<compile_context>
chip_gen: v5e
topology: v5e:2x2
jax: 0.10.0
libtpu: 0.0.40
codegen_flags: <defaults>
</compile_context>

<pallas_src>
import functools

import jax
import jax.numpy as jnp
import numpy as np
from jax.experimental import pallas as pl
from jax.experimental.pallas import tpu as pltpu

# Make XLA-side (reference) and Pallas-side f32 matmuls use the same, full
# precision so the correctness check is tight and deterministic.
jax.config.update("jax_default_matmul_precision", "highest")

_LN_EPS = 1e-5  # nn.LayerNorm default


def _layernorm(x, gamma, beta):
    """LayerNorm over the last axis (biased variance, like nn.LayerNorm)."""
    mu = jnp.mean(x, axis=-1, keepdims=True)
    xc = x - mu
    var = jnp.mean(xc * xc, axis=-1, keepdims=True)
    return xc * jax.lax.rsqrt(var + _LN_EPS) * gamma + beta


# --------------------------------------------------------------------------
# Kernel A: o = x + proj(MHSA(LN1(x)))   (one batch element per grid step)
# --------------------------------------------------------------------------
def _attn_block_kernel(x_ref, g1_ref, be1_ref, wqkv_ref, wp_ref, bp_ref, o_ref,
                       *, num_heads, scale):
    x = x_ref[0].astype(jnp.float32)                       # (N, D)
    n, d = x.shape
    hd = d // num_heads

    xn = _layernorm(x, g1_ref[...], be1_ref[...])
    qkv = jnp.dot(xn, wqkv_ref[...],
                  preferred_element_type=jnp.float32)      # (N, 3D), qkv_bias=False
    wp = wp_ref[...]                                       # (D, D)

    # TODO(synk): per-head static lane slices (head_dim=32) are fine at demo
    # scale; production shapes should use a head-batched einsum / flash layout
    # so the MXU sees 128-wide contractions.
    y = jnp.zeros((n, d), jnp.float32)
    for h in range(num_heads):
        q = qkv[:, h * hd:(h + 1) * hd]
        k = qkv[:, d + h * hd: d + (h + 1) * hd]
        v = qkv[:, 2 * d + h * hd: 2 * d + (h + 1) * hd]
        # q @ k^T without an explicit transpose (contract last dims).
        s = jax.lax.dot_general(q, k, (((1,), (1,)), ((), ())),
                                preferred_element_type=jnp.float32) * scale
        s = s - jnp.max(s, axis=-1, keepdims=True)
        p = jnp.exp(s)
        p = p / jnp.sum(p, axis=-1, keepdims=True)
        o_h = jnp.dot(p, v, preferred_element_type=jnp.float32)       # (N, hd)
        # concat-over-heads folded directly into the output projection
        y = y + jnp.dot(o_h, wp[h * hd:(h + 1) * hd, :],
                        preferred_element_type=jnp.float32)
    y = y + bp_ref[...]
    o_ref[0] = (x + y).astype(o_ref.dtype)


# --------------------------------------------------------------------------
# Kernel B: o = x + fc2(GELU(fc1(LN2(x))))   (tm token rows per grid step)
# --------------------------------------------------------------------------
def _mlp_block_kernel(x_ref, g2_ref, be2_ref, w1_ref, b1_ref, w2_ref, b2_ref,
                      o_ref):
    x = x_ref[...].astype(jnp.float32)                     # (tm, D)
    xn = _layernorm(x, g2_ref[...], be2_ref[...])
    h = jnp.dot(xn, w1_ref[...], preferred_element_type=jnp.float32)
    h = h + b1_ref[...]
    h = jax.nn.gelu(h, approximate=False)                  # exact erf == nn.GELU()
    y = jnp.dot(h, w2_ref[...], preferred_element_type=jnp.float32)
    y = y + b2_ref[...]
    o_ref[...] = (x + y).astype(o_ref.dtype)               # residual from same tile


# --------------------------------------------------------------------------
# Wrappers
# --------------------------------------------------------------------------
def _round_up(x, m):
    return ((x + m - 1) // m) * m


def _vmem_limit(est_bytes):
    # >=32 MiB (v5e scoped default is only 16 MiB), <=64 MiB (v7x physical).
    return int(min(max(est_bytes + (16 << 20), 32 << 20), 64 << 20))


def _choose_tm(m, d, h, itemsize, budget_bytes):
    """Largest row tile (multiple of 8 sublanes, <=1024) whose working set fits
    the VMEM budget; keeps >=2 grid steps when there is enough work (v7x)."""
    tm = min(1024, _round_up(m, 8))
    if m >= 256:
        tm = min(tm, _round_up((m + 1) // 2, 8))

    def est(t):
        io = 2 * 2 * t * d * itemsize                 # x-in + out, double-buffered
        weights = 2 * (2 * d * h + h + 3 * d) * 4     # W1, W2, biases, LN affine
        inter = t * h * 4 + 2 * t * d * 4             # fc1 activations + LN temps
        return io + weights + inter

    while tm > 8 and est(tm) > budget_bytes:
        tm -= 8
    return tm, est(tm)


def _attn_stage(x, p, *, num_heads):
    b, n, d = x.shape
    scale = float((d // num_heads) ** -0.5)
    kernel = functools.partial(_attn_block_kernel, num_heads=num_heads,
                               scale=scale)
    full2 = lambda i: (0, 0)
    est = (2 * 2 * n * d * x.dtype.itemsize
           + 2 * (3 * d * d + d * d + 3 * d) * 4)
    return pl.pallas_call(
        kernel,
        out_shape=jax.ShapeDtypeStruct((b, n, d), x.dtype),
        grid_spec=pltpu.PrefetchScalarGridSpec(
            num_scalar_prefetch=0,
            grid=(b,),
            in_specs=[
                pl.BlockSpec((1, n, d), lambda i: (i, 0, 0)),  # x (also residual)
                pl.BlockSpec((1, d), full2),                   # LN1 gamma
                pl.BlockSpec((1, d), full2),                   # LN1 beta
                pl.BlockSpec((d, 3 * d), full2),               # W_qkv (qkv_bias=False)
                pl.BlockSpec((d, d), full2),                   # W_proj
                pl.BlockSpec((1, d), full2),                   # b_proj
            ],
            out_specs=pl.BlockSpec((1, n, d), lambda i: (i, 0, 0)),
        ),
        compiler_params=pltpu.CompilerParams(
            dimension_semantics=("parallel",),
            vmem_limit_bytes=_vmem_limit(est)),
    )(x, p["g1"], p["be1"], p["wqkv"], p["wp"], p["bp"])


def _mlp_stage(x2d, p):
    m, d = x2d.shape
    h = p["w1"].shape[1]
    tm, est = _choose_tm(m, d, h, x2d.dtype.itemsize, budget_bytes=24 << 20)
    full2 = lambda i: (0, 0)
    return pl.pallas_call(
        _mlp_block_kernel,
        out_shape=jax.ShapeDtypeStruct((m, d), x2d.dtype),
        grid_spec=pltpu.PrefetchScalarGridSpec(
            num_scalar_prefetch=0,
            grid=(pl.cdiv(m, tm),),
            in_specs=[
                pl.BlockSpec((tm, d), lambda i: (i, 0)),  # x tile (also residual)
                pl.BlockSpec((1, d), full2),              # LN2 gamma
                pl.BlockSpec((1, d), full2),              # LN2 beta
                pl.BlockSpec((d, h), full2),              # W1
                pl.BlockSpec((1, h), full2),              # b1
                pl.BlockSpec((h, d), full2),              # W2
                pl.BlockSpec((1, d), full2),              # b2
            ],
            out_specs=pl.BlockSpec((tm, d), lambda i: (i, 0)),
        ),
        compiler_params=pltpu.CompilerParams(
            dimension_semantics=("parallel",),
            vmem_limit_bytes=_vmem_limit(est)),
    )(x2d, p["g2"], p["be2"], p["w1"], p["b1"], p["w2"], p["b2"])


def vit_block_forward(x, params, *, num_heads):
    """Block.forward(x): x = x + attn(LN1(x)); x = x + mlp(LN2(x))."""
    b, n, d = x.shape
    x1 = _attn_stage(x, params, num_heads=num_heads)
    out = _mlp_stage(x1.reshape(b * n, d), params)
    return out.reshape(b, n, d)


# --------------------------------------------------------------------------
# Pure-JAX reference (mirrors the PyTorch Block.forward)
# --------------------------------------------------------------------------
def _reference(x, p, *, num_heads):
    b, n, d = x.shape
    hd = d // num_heads
    xn = _layernorm(x.astype(jnp.float32), p["g1"], p["be1"])
    qkv = xn @ p["wqkv"]
    q, k, v = jnp.split(qkv, 3, axis=-1)

    def split_heads(t):
        return t.reshape(b, n, num_heads, hd).transpose(0, 2, 1, 3)

    q, k, v = split_heads(q), split_heads(k), split_heads(v)
    attn = (q @ jnp.swapaxes(k, -2, -1)) * (hd ** -0.5)
    attn = jax.nn.softmax(attn, axis=-1)
    o = (attn @ v).transpose(0, 2, 1, 3).reshape(b, n, d)
    x1 = x + (o @ p["wp"] + p["bp"])
    xn2 = _layernorm(x1, p["g2"], p["be2"])
    m = jax.nn.gelu(xn2 @ p["w1"] + p["b1"], approximate=False) @ p["w2"] + p["b2"]
    return x1 + m


if __name__ == "__main__":
    # Small but lane-dense ViT-style shapes: batch=2, seq=8 tokens,
    # embed_dim=128 (multiple of 128 lanes), 4 heads, mlp_ratio=4 -> hidden=512.
    B, N, D = 2, 8, 128
    NUM_HEADS = 4
    H = 4 * D

    key = jax.random.PRNGKey(0)
    ks = jax.random.split(key, 10)
    f32 = jnp.float32
    x = jax.random.normal(ks[0], (B, N, D), dtype=f32)

    # PyTorch Linear stores (out, in); weights here are pre-transposed (in, out).
    params = {
        "g1": (1.0 + 0.1 * jax.random.normal(ks[1], (1, D))).astype(f32),
        "be1": (0.05 * jax.random.normal(ks[2], (1, D))).astype(f32),
        "g2": (1.0 + 0.1 * jax.random.normal(ks[3], (1, D))).astype(f32),
        "be2": (0.05 * jax.random.normal(ks[4], (1, D))).astype(f32),
        "wqkv": (jax.random.normal(ks[5], (D, 3 * D)) / np.sqrt(D)).astype(f32),
        "wp": (jax.random.normal(ks[6], (D, D)) / np.sqrt(D)).astype(f32),
        "bp": (0.02 * jax.random.normal(ks[7], (1, D))).astype(f32),
        "w1": (jax.random.normal(ks[8], (D, H)) / np.sqrt(D)).astype(f32),
        "b1": jnp.zeros((1, H), f32),
        "w2": (jax.random.normal(ks[9], (H, D)) / np.sqrt(H)).astype(f32),
        "b2": jnp.zeros((1, D), f32),
    }

    out = vit_block_forward(x, params, num_heads=NUM_HEADS)
    out = jax.block_until_ready(out)
    ref = jax.block_until_ready(_reference(x, params, num_heads=NUM_HEADS))

    ok = (out.shape == (B, N, D)
          and bool(jnp.all(jnp.isfinite(out)))
          and np.allclose(np.asarray(out), np.asarray(ref),
                          atol=2e-3, rtol=2e-3))
    if ok:
        print("KERNEL_OK")
</pallas_src>

<mosaic_0001>
module attributes {stable_mosaic.version = 11 : i64} {
  func.func @_attn_block_kernel(%arg0: i32, %arg1: memref<1x8x128xf32, #tpu.memory_space<vmem>>, %arg2: memref<1x128xf32, #tpu.memory_space<vmem>>, %arg3: memref<1x128xf32, #tpu.memory_space<vmem>>, %arg4: memref<128x384xf32, #tpu.memory_space<vmem>>, %arg5: memref<128x128xf32, #tpu.memory_space<vmem>>, %arg6: memref<1x128xf32, #tpu.memory_space<vmem>>, %arg7: memref<1x8x128xf32, #tpu.memory_space<vmem>>) attributes {dimension_semantics = [#tpu.dimension_semantics<parallel>], iteration_bounds = array<i64: 2>, scalar_prefetch = 0 : i64, scratch_operands = 0 : i64, tpu.core_type = #tpu.core_type<tc>, window_params = [{transform_indices = @transform_0, window_bounds = array<i64: 1, 8, 128>}, {pipeline_mode = #tpu.pipeline_mode<synchronous>, transform_indices = @transform_1, window_bounds = array<i64: 1, 128>}, {pipeline_mode = #tpu.pipeline_mode<synchronous>, transform_indices = @transform_2, window_bounds = array<i64: 1, 128>}, {pipeline_mode = #tpu.pipeline_mode<synchronous>, transform_indices = @transform_3, window_bounds = array<i64: 128, 384>}, {pipeline_mode = #tpu.pipeline_mode<synchronous>, transform_indices = @transform_4, window_bounds = array<i64: 128, 128>}, {pipeline_mode = #tpu.pipeline_mode<synchronous>, transform_indices = @transform_5, window_bounds = array<i64: 1, 128>}, {transform_indices = @transform_6, window_bounds = array<i64: 1, 8, 128>}]} {
    %c0 = arith.constant 0 : index
    %c0_0 = arith.constant 0 : index
    %c0_1 = arith.constant 0 : index
    %0 = vector.load %arg1[%c0, %c0_0, %c0_1] : memref<1x8x128xf32, #tpu.memory_space<vmem>>, vector<1x8x128xf32>
    %1 = vector.shape_cast %0 : vector<1x8x128xf32> to vector<8x128xf32>
    %c0_2 = arith.constant 0 : index
    %c0_3 = arith.constant 0 : index
    %2 = vector.load %arg2[%c0_2, %c0_3] : memref<1x128xf32, #tpu.memory_space<vmem>>, vector<1x128xf32>
    %c0_4 = arith.constant 0 : index
    %c0_5 = arith.constant 0 : index
    %3 = vector.load %arg3[%c0_4, %c0_5] : memref<1x128xf32, #tpu.memory_space<vmem>>, vector<1x128xf32>
    %cst = arith.constant dense<0.000000e+00> : vector<8xf32>
    %4 = vector.multi_reduction <add>, %1, %cst [1] : vector<8x128xf32> to vector<8xf32>
    %5 = vector.shape_cast %4 : vector<8xf32> to vector<8x1xf32>
    %cst_6 = arith.constant 1.280000e+02 : f32
    %6 = vector.broadcast %cst_6 : f32 to vector<8x1xf32>
    %7 = arith.divf %5, %6 : vector<8x1xf32>
    %8 = vector.broadcast %7 : vector<8x1xf32> to vector<8x128xf32>
    %9 = arith.subf %1, %8 : vector<8x128xf32>
    %10 = arith.mulf %9, %9 : vector<8x128xf32>
    %cst_7 = arith.constant dense<0.000000e+00> : vector<8xf32>
    %11 = vector.multi_reduction <add>, %10, %cst_7 [1] : vector<8x128xf32> to vector<8xf32>
    %12 = vector.shape_cast %11 : vector<8xf32> to vector<8x1xf32>
    %cst_8 = arith.constant 1.280000e+02 : f32
    %13 = vector.broadcast %cst_8 : f32 to vector<8x1xf32>
    %14 = arith.divf %12, %13 : vector<8x1xf32>
    %cst_9 = arith.constant 9.99999974E-6 : f32
    %15 = vector.broadcast %cst_9 : f32 to vector<8x1xf32>
    %16 = arith.addf %14, %15 : vector<8x1xf32>
    %17 = math.rsqrt %16 : vector<8x1xf32>
    %18 = vector.broadcast %17 : vector<8x1xf32> to vector<8x128xf32>
    %19 = arith.mulf %9, %18 : vector<8x128xf32>
    %20 = vector.broadcast %2 : vector<1x128xf32> to vector<8x128xf32>
    %21 = arith.mulf %19, %20 : vector<8x128xf32>
    %22 = vector.broadcast %3 : vector<1x128xf32> to vector<8x128xf32>
    %23 = arith.addf %21, %22 : vector<8x128xf32>
    %c0_10 = arith.constant 0 : index
    %c0_11 = arith.constant 0 : index
    %24 = vector.load %arg4[%c0_10, %c0_11] : memref<128x384xf32, #tpu.memory_space<vmem>>, vector<128x384xf32>
    %cst_12 = arith.constant dense<0.000000e+00> : vector<8x384xf32>
    %25 = tpu.matmul %23, %24, %cst_12 {dimension_numbers = #tpu.dot_dimension_numbers<[1], [0], [0], [1], [0, 0, 1, 1], [], []>, precision = #tpu.contract_precision<fp32>} : vector<8x128xf32>, vector<128x384xf32>, vector<8x384xf32> -> vector<8x384xf32>
    %c0_13 = arith.constant 0 : index
    %c0_14 = arith.constant 0 : index
    %26 = vector.load %arg5[%c0_13, %c0_14] : memref<128x128xf32, #tpu.memory_space<vmem>>, vector<128x128xf32>
    %cst_15 = arith.constant 0.000000e+00 : f32
    %27 = vector.broadcast %cst_15 : f32 to vector<8x128xf32>
    %28 = vector.extract_strided_slice %25 {offsets = [0, 0], sizes = [8, 32], strides = [1, 1]} : vector<8x384xf32> to vector<8x32xf32>
    %29 = vector.extract_strided_slice %25 {offsets = [0, 128], sizes = [8, 32], strides = [1, 1]} : vector<8x384xf32> to vector<8x32xf32>
    %30 = vector.extract_strided_slice %25 {offsets = [0, 256], sizes = [8, 32], strides = [1, 1]} : vector<8x384xf32> to vector<8x32xf32>
    %cst_16 = arith.constant dense<0.000000e+00> : vector<8x8xf32>
    %31 = tpu.matmul %28, %29, %cst_16 {dimension_numbers = #tpu.dot_dimension_numbers<[1], [1], [0], [0], [0, 0, 1, 0], [], []>, precision = #tpu.contract_precision<fp32>} : vector<8x32xf32>, vector<8x32xf32>, vector<8x8xf32> -> vector<8x8xf32>
    %cst_17 = arith.constant 0.176776692 : f32
    %32 = vector.broadcast %cst_17 : f32 to vector<8x8xf32>
    %33 = arith.mulf %31, %32 : vector<8x8xf32>
    %cst_18 = arith.constant dense<0xFF800000> : vector<8xf32>
    %34 = vector.multi_reduction <maximumf>, %33, %cst_18 [1] : vector<8x8xf32> to vector<8xf32>
    %35 = vector.shape_cast %34 : vector<8xf32> to vector<8x1xf32>
    %36 = vector.broadcast %35 : vector<8x1xf32> to vector<8x8xf32>
    %37 = arith.subf %33, %36 : vector<8x8xf32>
    %38 = math.exp %37 : vector<8x8xf32>
    %cst_19 = arith.constant dense<0.000000e+00> : vector<8xf32>
    %39 = vector.multi_reduction <add>, %38, %cst_19 [1] : vector<8x8xf32> to vector<8xf32>
    %40 = vector.shape_cast %39 : vector<8xf32> to vector<8x1xf32>
    %41 = vector.broadcast %40 : vector<8x1xf32> to vector<8x8xf32>
    %42 = arith.divf %38, %41 : vector<8x8xf32>
    %cst_20 = arith.constant dense<0.000000e+00> : vector<8x32xf32>
    %43 = tpu.matmul %42, %30, %cst_20 {dimension_numbers = #tpu.dot_dimension_numbers<[1], [0], [0], [1], [0, 0, 1, 1], [], []>, precision = #tpu.contract_precision<fp32>} : vector<8x8xf32>, vector<8x32xf32>, vector<8x32xf32> -> vector<8x32xf32>
    %44 = vector.extract_strided_slice %26 {offsets = [0, 0], sizes = [32, 128], strides = [1, 1]} : vector<128x128xf32> to vector<32x128xf32>
    %cst_21 = arith.constant dense<0.000000e+00> : vector<8x128xf32>
    %45 = tpu.matmul %43, %44, %cst_21 {dimension_numbers = #tpu.dot_dimension_numbers<[1], [0], [0], [1], [0, 0, 1, 1], [], []>, precision = #tpu.contract_precision<fp32>} : vector<8x32xf32>, vector<32x128xf32>, vector<8x128xf32> -> vector<8x128xf32>
    %46 = arith.addf %27, %45 : vector<8x128xf32>
    %47 = vector.extract_strided_slice %25 {offsets = [0, 32], sizes = [8, 32], strides = [1, 1]} : vector<8x384xf32> to vector<8x32xf32>
    %48 = vector.extract_strided_slice %25 {offsets = [0, 160], sizes = [8, 32], strides = [1, 1]} : vector<8x384xf32> to vector<8x32xf32>
    %49 = vector.extract_strided_slice %25 {offsets = [0, 288], sizes = [8, 32], strides = [1, 1]} : vector<8x384xf32> to vector<8x32xf32>
    %cst_22 = arith.constant dense<0.000000e+00> : vector<8x8xf32>
    %50 = tpu.matmul %47, %48, %cst_22 {dimension_numbers = #tpu.dot_dimension_numbers<[1], [1], [0], [0], [0, 0, 1, 0], [], []>, precision = #tpu.contract_precision<fp32>} : vector<8x32xf32>, vector<8x32xf32>, vector<8x8xf32> -> vector<8x8xf32>
    %cst_23 = arith.constant 0.176776692 : f32
    %51 = vector.broadcast %cst_23 : f32 to vector<8x8xf32>
    %52 = arith.mulf %50, %51 : vector<8x8xf32>
    %cst_24 = arith.constant dense<0xFF800000> : vector<8xf32>
    %53 = vector.multi_reduction <maximumf>, %52, %cst_24 [1] : vector<8x8xf32> to vector<8xf32>
    %54 = vector.shape_cast %53 : vector<8xf32> to vector<8x1xf32>
    %55 = vector.broadcast %54 : vector<8x1xf32> to vector<8x8xf32>
    %56 = arith.subf %52, %55 : vector<8x8xf32>
    %57 = math.exp %56 : vector<8x8xf32>
    %cst_25 = arith.constant dense<0.000000e+00> : vector<8xf32>
    %58 = vector.multi_reduction <add>, %57, %cst_25 [1] : vector<8x8xf32> to vector<8xf32>
    %59 = vector.shape_cast %58 : vector<8xf32> to vector<8x1xf32>
    %60 = vector.broadcast %59 : vector<8x1xf32> to vector<8x8xf32>
    %61 = arith.divf %57, %60 : vector<8x8xf32>
    %cst_26 = arith.constant dense<0.000000e+00> : vector<8x32xf32>
    %62 = tpu.matmul %61, %49, %cst_26 {dimension_numbers = #tpu.dot_dimension_numbers<[1], [0], [0], [1], [0, 0, 1, 1], [], []>, precision = #tpu.contract_precision<fp32>} : vector<8x8xf32>, vector<8x32xf32>, vector<8x32xf32> -> vector<8x32xf32>
    %63 = vector.extract_strided_slice %26 {offsets = [32, 0], sizes = [32, 128], strides = [1, 1]} : vector<128x128xf32> to vector<32x128xf32>
    %cst_27 = arith.constant dense<0.000000e+00> : vector<8x128xf32>
    %64 = tpu.matmul %62, %63, %cst_27 {dimension_numbers = #tpu.dot_dimension_numbers<[1], [0], [0], [1], [0, 0, 1, 1], [], []>, precision = #tpu.contract_precision<fp32>} : vector<8x32xf32>, vector<32x128xf32>, vector<8x128xf32> -> vector<8x128xf32>
    %65 = arith.addf %46, %64 : vector<8x128xf32>
    %66 = vector.extract_strided_slice %25 {offsets = [0, 64], sizes = [8, 32], strides = [1, 1]} : vector<8x384xf32> to vector<8x32xf32>
    %67 = vector.extract_strided_slice %25 {offsets = [0, 192], sizes = [8, 32], strides = [1, 1]} : vector<8x384xf32> to vector<8x32xf32>
    %68 = vector.extract_strided_slice %25 {offsets = [0, 320], sizes = [8, 32], strides = [1, 1]} : vector<8x384xf32> to vector<8x32xf32>
    %cst_28 = arith.constant dense<0.000000e+00> : vector<8x8xf32>
    %69 = tpu.matmul %66, %67, %cst_28 {dimension_numbers = #tpu.dot_dimension_numbers<[1], [1], [0], [0], [0, 0, 1, 0], [], []>, precision = #tpu.contract_precision<fp32>} : vector<8x32xf32>, vector<8x32xf32>, vector<8x8xf32> -> vector<8x8xf32>
    %cst_29 = arith.constant 0.176776692 : f32
    %70 = vector.broadcast %cst_29 : f32 to vector<8x8xf32>
    %71 = arith.mulf %69, %70 : vector<8x8xf32>
    %cst_30 = arith.constant dense<0xFF800000> : vector<8xf32>
    %72 = vector.multi_reduction <maximumf>, %71, %cst_30 [1] : vector<8x8xf32> to vector<8xf32>
    %73 = vector.shape_cast %72 : vector<8xf32> to vector<8x1xf32>
    %74 = vector.broadcast %73 : vector<8x1xf32> to vector<8x8xf32>
    %75 = arith.subf %71, %74 : vector<8x8xf32>
    %76 = math.exp %75 : vector<8x8xf32>
    %cst_31 = arith.constant dense<0.000000e+00> : vector<8xf32>
    %77 = vector.multi_reduction <add>, %76, %cst_31 [1] : vector<8x8xf32> to vector<8xf32>
    %78 = vector.shape_cast %77 : vector<8xf32> to vector<8x1xf32>
    %79 = vector.broadcast %78 : vector<8x1xf32> to vector<8x8xf32>
    %80 = arith.divf %76, %79 : vector<8x8xf32>
    %cst_32 = arith.constant dense<0.000000e+00> : vector<8x32xf32>
    %81 = tpu.matmul %80, %68, %cst_32 {dimension_numbers = #tpu.dot_dimension_numbers<[1], [0], [0], [1], [0, 0, 1, 1], [], []>, precision = #tpu.contract_precision<fp32>} : vector<8x8xf32>, vector<8x32xf32>, vector<8x32xf32> -> vector<8x32xf32>
    %82 = vector.extract_strided_slice %26 {offsets = [64, 0], sizes = [32, 128], strides = [1, 1]} : vector<128x128xf32> to vector<32x128xf32>
    %cst_33 = arith.constant dense<0.000000e+00> : vector<8x128xf32>
    %83 = tpu.matmul %81, %82, %cst_33 {dimension_numbers = #tpu.dot_dimension_numbers<[1], [0], [0], [1], [0, 0, 1, 1], [], []>, precision = #tpu.contract_precision<fp32>} : vector<8x32xf32>, vector<32x128xf32>, vector<8x128xf32> -> vector<8x128xf32>
    %84 = arith.addf %65, %83 : vector<8x128xf32>
    %85 = vector.extract_strided_slice %25 {offsets = [0, 96], sizes = [8, 32], strides = [1, 1]} : vector<8x384xf32> to vector<8x32xf32>
    %86 = vector.extract_strided_slice %25 {offsets = [0, 224], sizes = [8, 32], strides = [1, 1]} : vector<8x384xf32> to vector<8x32xf32>
    %87 = vector.extract_strided_slice %25 {offsets = [0, 352], sizes = [8, 32], strides = [1, 1]} : vector<8x384xf32> to vector<8x32xf32>
    %cst_34 = arith.constant dense<0.000000e+00> : vector<8x8xf32>
    %88 = tpu.matmul %85, %86, %cst_34 {dimension_numbers = #tpu.dot_dimension_numbers<[1], [1], [0], [0], [0, 0, 1, 0], [], []>, precision = #tpu.contract_precision<fp32>} : vector<8x32xf32>, vector<8x32xf32>, vector<8x8xf32> -> vector<8x8xf32>
    %cst_35 = arith.constant 0.176776692 : f32
    %89 = vector.broadcast %cst_35 : f32 to vector<8x8xf32>
    %90 = arith.mulf %88, %89 : vector<8x8xf32>
    %cst_36 = arith.constant dense<0xFF800000> : vector<8xf32>
    %91 = vector.multi_reduction <maximumf>, %90, %cst_36 [1] : vector<8x8xf32> to vector<8xf32>
    %92 = vector.shape_cast %91 : vector<8xf32> to vector<8x1xf32>
    %93 = vector.broadcast %92 : vector<8x1xf32> to vector<8x8xf32>
    %94 = arith.subf %90, %93 : vector<8x8xf32>
    %95 = math.exp %94 : vector<8x8xf32>
    %cst_37 = arith.constant dense<0.000000e+00> : vector<8xf32>
    %96 = vector.multi_reduction <add>, %95, %cst_37 [1] : vector<8x8xf32> to vector<8xf32>
    %97 = vector.shape_cast %96 : vector<8xf32> to vector<8x1xf32>
    %98 = vector.broadcast %97 : vector<8x1xf32> to vector<8x8xf32>
    %99 = arith.divf %95, %98 : vector<8x8xf32>
    %cst_38 = arith.constant dense<0.000000e+00> : vector<8x32xf32>
    %100 = tpu.matmul %99, %87, %cst_38 {dimension_numbers = #tpu.dot_dimension_numbers<[1], [0], [0], [1], [0, 0, 1, 1], [], []>, precision = #tpu.contract_precision<fp32>} : vector<8x8xf32>, vector<8x32xf32>, vector<8x32xf32> -> vector<8x32xf32>
    %101 = vector.extract_strided_slice %26 {offsets = [96, 0], sizes = [32, 128], strides = [1, 1]} : vector<128x128xf32> to vector<32x128xf32>
    %cst_39 = arith.constant dense<0.000000e+00> : vector<8x128xf32>
    %102 = tpu.matmul %100, %101, %cst_39 {dimension_numbers = #tpu.dot_dimension_numbers<[1], [0], [0], [1], [0, 0, 1, 1], [], []>, precision = #tpu.contract_precision<fp32>} : vector<8x32xf32>, vector<32x128xf32>, vector<8x128xf32> -> vector<8x128xf32>
    %103 = arith.addf %84, %102 : vector<8x128xf32>
    %c0_40 = arith.constant 0 : index
    %c0_41 = arith.constant 0 : index
    %104 = vector.load %arg6[%c0_40, %c0_41] : memref<1x128xf32, #tpu.memory_space<vmem>>, vector<1x128xf32>
    %105 = vector.broadcast %104 : vector<1x128xf32> to vector<8x128xf32>
    %106 = arith.addf %103, %105 : vector<8x128xf32>
    %107 = arith.addf %1, %106 : vector<8x128xf32>
    %c0_42 = arith.constant 0 : index
    %c0_43 = arith.constant 0 : index
    %c0_44 = arith.constant 0 : index
    %108 = vector.load %arg7[%c0_42, %c0_43, %c0_44] : memref<1x8x128xf32, #tpu.memory_space<vmem>>, vector<1x8x128xf32>
    %109 = vector.shape_cast %108 : vector<1x8x128xf32> to vector<8x128xf32>
    %110 = vector.shape_cast %107 : vector<8x128xf32> to vector<1x8x128xf32>
    tpu.vector_store %arg7[%c0_42, %c0_43, %c0_44], %110 {strides = array<i32>} : memref<1x8x128xf32, #tpu.memory_space<vmem>>, vector<1x8x128xf32>,
    return
  }
  func.func @transform_0(%arg0: i32) -> (i32, i32, i32) {
    %c0_i32 = arith.constant 0 : i32
    %c0_i32_0 = arith.constant 0 : i32
    %c0_i32_1 = arith.constant 0 : i32
    return %arg0, %c0_i32, %c0_i32_0 : i32, i32, i32
  }
  func.func @transform_1(%arg0: i32) -> (i32, i32) {
    %c0_i32 = arith.constant 0 : i32
    %c0_i32_0 = arith.constant 0 : i32
    %c0_i32_1 = arith.constant 0 : i32
    return %c0_i32, %c0_i32_0 : i32, i32
  }
  func.func @transform_2(%arg0: i32) -> (i32, i32) {
    %c0_i32 = arith.constant 0 : i32
    %c0_i32_0 = arith.constant 0 : i32
    %c0_i32_1 = arith.constant 0 : i32
    return %c0_i32, %c0_i32_0 : i32, i32
  }
  func.func @transform_3(%arg0: i32) -> (i32, i32) {
    %c0_i32 = arith.constant 0 : i32
    %c0_i32_0 = arith.constant 0 : i32
    %c0_i32_1 = arith.constant 0 : i32
    return %c0_i32, %c0_i32_0 : i32, i32
  }
  func.func @transform_4(%arg0: i32) -> (i32, i32) {
    %c0_i32 = arith.constant 0 : i32
    %c0_i32_0 = arith.constant 0 : i32
    %c0_i32_1 = arith.constant 0 : i32
    return %c0_i32, %c0_i32_0 : i32, i32
  }
  func.func @transform_5(%arg0: i32) -> (i32, i32) {
    %c0_i32 = arith.constant 0 : i32
    %c0_i32_0 = arith.constant 0 : i32
    %c0_i32_1 = arith.constant 0 : i32
    return %c0_i32, %c0_i32_0 : i32, i32
  }
  func.func @transform_6(%arg0: i32) -> (i32, i32, i32) {
    %c0_i32 = arith.constant 0 : i32
    %c0_i32_0 = arith.constant 0 : i32
    %c0_i32_1 = arith.constant 0 : i32
    return %arg0, %c0_i32, %c0_i32_0 : i32, i32, i32
  }
}

</mosaic_0001>

<bundles_post_ra>
// kernel: tpu_custom_call.1
= control target key start
LH: loop header
LB: loop body
LE: loop exit
PB: predicated region body
PF: predicated region fallthrough
CT: control target
= control target key end

     0   :  { %11 = vsyncpa [#allocation3], 0  ;;  %s5097_s0 = inlined_call_operand.hbm [shape: f32[2,8,128], index: 0, kind: input, shape index: {}]   ;;  %s5098_s1 = inlined_call_operand.hbm [shape: f32[1,128], index: 1, kind: input, shape index: {}]   ;;  %s5099_s2 = inlined_call_operand.vmem [shape: f32[1,128], index: 2, kind: input, shape index: {}]   ;;  %s5100_s3 = inlined_call_operand.hbm [shape: f32[128,384], index: 3, kind: input, shape index: {}]   ;;  %s5101_s4 = inlined_call_operand.hbm [shape: f32[128,128], index: 4, kind: input, shape index: {}]   ;;  %s5102_s5 = inlined_call_operand.vmem [shape: f32[1,128], index: 5, kind: input, shape index: {}]   ;;  %s5103_s6 = inlined_call_operand.hbm [shape: f32[2,8,128], index: 6, kind: output, shape index: {}]  }
   0x1   :  { %13 = vsyncpa [#allocation3 + $0x1], 0 }
   0x2   :  { %14 = vsyncpa [#allocation6], 0 }
   0x3   :  { %15 = vsyncpa [#allocation9], 0 }
   0x4   :  { %16 = vsyncpa [#allocation4], 0 }
   0x5   :  { %18 = vsyncpa [#allocation4 + $0x1], 0  ;;  %s4009_s21 = smov 0   ;;  %s4011_s22 = smov 0  }
   0x6   :  { %s4013_s23 = smov 0   ;;  %s4015_s24 = smov 0  }
   0x7 LB: > { %s4030_s25 = sadd.s32 4294967295, %s3961_s24   ;;  %s3640_s26 = sadd.s32 4294967294, %s3961_s24   ;;  %s3961_s24 = sphi %s4015_s24, %s5114_s24   ;;  %s3957_s23 = sphi %s4013_s23, %s5113_s23   ;;  %s3953_s22 = sphi %s4011_s22, %s5112_s22   ;;  %s3949_s21 = sphi %s4009_s21, %s5111_s21  }
   0x8   : > { %p44_p0 = scmp.ne.s32.totalorder %s3953_s22, %s3949_s21  ;;  %p45_p1 = scmp.eq.s32.totalorder %s4030_s25, 0 }
   0x9   : > { %p173_p2 = scmp.eq.s32.totalorder %s4030_s25, 1  ;;  %p179_p3 = scmp.eq.s32.totalorder %s3640_s26, 1 }
   0xa   : > { %p4039_p4 = por %p45_p1, %p44_p0  ;;  %p3641_p5 = scmp.ge.s32.totalorder %s3961_s24, 1 }
   0xb   : > { %p4044_p6 = por %p179_p3, %p44_p0  ;;  %p186_p7 = scmp.lt.s32.totalorder %s3961_s24, 3 }
   0xc   : > { %s198_s7 = sshll.u32 %s5098_s1, 4  ;;  %s3963_s9 = smov [#allocation5]   ;;  %s199_s7 = int_to_ptr.hbm [resolvable:$true] %s198_s7 }
   0xd   : > { %p4052_p8 = pnand %p3641_p5, %p186_p7  ;;  %s200_s10 = sshll.u32 %s3963_s9, 4  ;;  %s201_s10 = int_to_ptr.vmem [resolvable:$true] %s200_s10 }
   0xe   : > { %s212_s13 = sshll.u32 %s5100_s3, 4  ;;  %s3964_s15 = smov [#allocation7]   ;;  %s213_s13 = int_to_ptr.hbm [resolvable:$true] %s212_s13 }
   0xf   : > { %p3674_p10 = pneg %p4052_p8  ;;  %s214_s16 = sshll.u32 %s3964_s15, 4  ;;  %s215_s16 = int_to_ptr.vmem [resolvable:$true] %s214_s16 }
  0x10   : > { %s3965_s17 = smov 384   ;;  %s3966_s18 = smov 24  }
  0x11   : > { %p4064_p11 = pnand %p3674_p10, %p45_p1  ;;  %s226_s26 = sshll.u32 %s5101_s4, 4  ;;  %s227_s26 = int_to_ptr.hbm [resolvable:$true] %s226_s26 }
  0x12   : > { %s3967_s29 = smov [#allocation8]   ;;  %s3969_s9 = smov 8  }
  0x13   : > { %3677 = dma.hbm_to_vmem [thread:$0]  (!%p4064_p11), %s199_s7, 16, %s201_s10, [#allocation6]  }
  0x14   : > { %3680 = dma.hbm_to_vmem [thread:$0]  (!%p4064_p11), %s213_s13, 6144, %s215_s16, [#allocation6], %s3965_s17, %s3965_s17, %s3966_s18  }
  0x15   : > { %s228_s30 = sshll.u32 %s3967_s29, 4  ;;  %s3968_s7 = smov 128   ;;  %s229_s30 = int_to_ptr.vmem [resolvable:$true] %s228_s30 }
  0x16   : > { %3683 = dma.hbm_to_vmem [thread:$0]  (!%p4064_p11), %s227_s26, 2048, %s229_s30, [#allocation9], %s3968_s7, %s3968_s7, %s3969_s9  }
  0x17   : > { %s4078_s10 = sadd.s32 1, %s3961_s24   ;;  %s31_s12 = sadd.s32 1, %s3957_s23 }
  0x18   : > { %s28_s11 = ssub.s32 %s3961_s24, %s4078_s10  ;;  %p38_p13 = scmp.ne.s32.totalorder %s3957_s23, %s3953_s22 }
  0x19   : > { %p29_p12 = scmp.eq.s32.totalorder %s28_s11, 0  ;;  %p39_p0 = scmp.eq.s32.totalorder %s3961_s24, 0 }
  0x1a   : > { %p4091_p3 = por %p173_p2, %p38_p13  ;;  %p3695_p5 = scmp.lt.s32.totalorder %s3961_s24, 2 }
  0x1b   : > { %s4087_s13 = scalar_select %p29_p12, %s3957_s23, %s31_s12  }
  0x1c   : > { %s245_s16 = sand.u32 1, %s3957_s23   ;;  %s3647_s17 = sshll.u32 %s3961_s24, 3 }
  0x1d   : > { %p40_p7 = por %p39_p0, %p38_p13  ;;  %s3646_s14 = sshll.u32 %s245_s16, 3 }
  0x1e   : > { %s253_s20 = scalar_lea.hbm %s5097_s0, %s3647_s17  ;;  %s249_s29 = scalar_lea.vmem [#allocation2], %s3646_s14 }
  0x1f   : > { %s255_s26 = sshll.u32 %s253_s20, 4  ;;  %s257_s30 = sshll.u32 %s249_s29, 4  ;;  %s256_s26 = int_to_ptr.hbm [resolvable:$true] %s255_s26  ;;  %s258_s30 = int_to_ptr.vmem [resolvable:$true] %s257_s30 }
  0x20   : > { %p4101_p10 = pnand %p3695_p5, %p40_p7  ;;  %s246_s9 = scalar_lea.sflag [#allocation3], %s245_s16 }
  0x21   : > { %s3857_s11 = sshra.s32 %s256_s26, 4  ;;  %s3864_s14 = scalar_lea.hbm %s5097_s0, 16  ;;  %s3858_s11 = int_to_ptr.hbm [resolvable:$true] %s3857_s11 }
  0x22   : > { %s3859_s12 = scalar_lea.hbm %s3858_s11, 8  ;;  %p3861_p11 = pneg %p4101_p10 }
  0x23   : > { %p3860_p2 = scmp.ne.s32.totalorder %s3858_s11, %s3859_s12  ;;  %p3865_p0 = scmp.lt.s32.totalorder %s3858_s11, %s5097_s0 }
  0x24   : > { %p3866_p5 = scmp.lt.s32.totalorder %s3864_s14, %s3859_s12 }
  0x25   : > { %p3862_p12 = pnand %p3861_p11, %p3860_p2 }
  0x26   : > { %p3867_p7 = por %p3866_p5, %p3865_p0 }
  0x27   : > { %p3863_p13 = pneg %p3862_p12 }
  0x29   : > { %p3868_p9 = pnand %p3867_p7, %p3863_p13 }
  0x2b   : > { %3871 = shalt.err (!%p3868_p9)
}
  0x2c   : > { %3687 = dma.hbm_to_vmem [thread:$0]  (!%p4101_p10), %s256_s26, 128, %s258_s30, %s246_s9  }
  0x2d   : > { %266 = sbr.rel (%p4052_p8) target bundleno = 2856 (0xb28), region = 44  ;;  %s4118_s16 = sand.u32 (!%p4052_p8), 1, %s3953_s22  }
  0x2e   : > { %s3649_s29 = sshll.u32 (!%p4052_p8), %s4118_s16, 3  ;;  %s269_s17 = scalar_lea.sflag (!%p4052_p8), [#allocation3], %s4118_s16 }
  0x2f   : > { %s4124_s11 = scalar_lea.vmem (!%p4052_p8), [#allocation2], %s3649_s29 }
  0x32   : > { %3932 = dma.done.wait (%p4039_p4), %s269_s17, 128  }
  0x33   : > { %3934 = vsyncadd (%p4039_p4), %s269_s17, 4294967168 }
  0x34   : > { %3936 = dma.done.wait (%p45_p1), [#allocation6], 6160  }
  0x35   : > { %3938 = vsyncadd (%p45_p1), [#allocation6], 4294961136 }
  0x36   : > { %3940 = dma.done.wait (%p45_p1), [#allocation9], 2048  }
  0x37   : > { %3942 = vsyncadd (%p45_p1), [#allocation9], 4294965248  ;;  %v4139_v0 = vld [vmem:[%s4124_s11] sm:$0xff]  ;;  %v3970_v1 = vmov 128.0   ;;  %v391_v8 = vld [vmem:[#allocation7 + $0x120] sm:$0xff]  ;;  %vm1442_vm4 = vcmask 261120  }
  0x38   : > { %320 = vadd.xlane.f32.xlu0 %v4139_v0  ;;  %3746 = vrcp.f32 %v3970_v1  ;;  %v400_v2 = vld [vmem:[#allocation7 + $0x168] sm:$0xff]  ;;  %v397_v3 = vld [vmem:[#allocation7 + $0x150] sm:$0xff]  ;;  %v394_v4 = vld [vmem:[#allocation7 + $0x138] sm:$0xff]  ;;  %v4148_v11 = vand.u32 4294901760, %v391_v8  ;;  %s3971_s26 = smov 96   ;;  %vm1596_vm5 = vcmask 64512  }
  0x39   : > { %v4142_v5 = vand.u32 4294901760, %v400_v2  ;;  %v4144_v6 = vand.u32 4294901760, %v397_v3  ;;  %v4146_v7 = vand.u32 4294901760, %v394_v4  ;;  %v388_v9 = vld [vmem:[#allocation7 + $0x108] sm:$0xff]  ;;  %v385_v10 = vld [vmem:[#allocation7 + $0xf0] sm:$0xff]  ;;  %v382_v14 = vld [vmem:[#allocation7 + $0xd8] sm:$0xff] }
  0x3a   : > { %v4150_v12 = vand.u32 4294901760, %v388_v9  ;;  %v4152_v13 = vand.u32 4294901760, %v385_v10  ;;  %v379_v15 = vld [vmem:[#allocation7 + $0xc0] sm:$0xff]  ;;  %v4167_v20 = vand.u32 4294901760, %v382_v14  ;;  %v4170_v21 = vsub.f32 %v391_v8, %v4148_v11  ;;  %v376_v37 = vld [vmem:[#allocation7 + $0xa8] sm:$0xff]  ;;  %v373_v38 = vld [vmem:[#allocation7 + $0x90] sm:$0xff] }
  0x3b   : > { %v4157_v17 = vsub.f32 %v400_v2, %v4142_v5  ;;  %v4160_v18 = vsub.f32 %v397_v3, %v4144_v6  ;;  %v4163_v19 = vsub.f32 %v394_v4, %v4146_v7  ;;  %600 = vmatpush.msra.mxu3 %v4142_v5  ;;  %404 = vmatpush.msra.mxu0 %v4142_v5  ;;  %v4178_v24 = vand.u32 4294901760, %v379_v15  ;;  %v370_v39 = vld [vmem:[#allocation7 + $0x78] sm:$0xff]  ;;  %v367_v46 = vld [vmem:[#allocation7 + $0x60] sm:$0xff]  ;;  %v364_v53 = vld [vmem:[#allocation7 + $0x48] sm:$0xff]  ;;  %s3972_s30 = smov 64   ;;  %s3973_s7 = smov 32  }
  0x3c   : > { %v4173_v22 = vsub.f32 %v388_v9, %v4150_v12  ;;  %v4176_v23 = vsub.f32 %v385_v10, %v4152_v13  ;;  %v464_v29 = vand.u32 4294901760, %v4170_v21  ;;  %v4190_v31 = vsub.f32 %v382_v14, %v4167_v20  ;;  %v361_v60 = vld [vmem:[#allocation7 + $0x30] sm:$0xff]  ;;  %v358_v3 = vld [vmem:[#allocation7 + $0x18] sm:$0xff]  ;;  %s3655_s9 = sshll.u32 %s4030_s25, 3  ;;  %s316_s17 = scalar_lea.vmem [#allocation10], %s3649_s29 }
  0x3d   : > { %v446_v25 = vand.u32 4294901760, %v4157_v17  ;;  %v452_v26 = vand.u32 4294901760, %v4160_v18  ;;  %547 = vmatpush.msra.mxu2 %v4157_v17  ;;  %v458_v27 = vand.u32 4294901760, %v4163_v19  ;;  %602 = vmatpush.msra.mxu3 %v4144_v6  ;;  %v4206_v36 = vsub.f32 %v379_v15, %v4178_v24  ;;  %s3536_s20 = scalar_lea.hbm %s5103_s6, %s3655_s9  ;;  %s3538_s27 = sshll.u32 %s316_s17, 4  ;;  %s3539_s27 = int_to_ptr.vmem [resolvable:$true] %s3538_s27 }
  0x3e   : > { %v4154_v16 = vpop.eup %3746  ;;  %v470_v30 = vand.u32 4294901760, %v4173_v22  ;;  %406 = vmatpush.msra.mxu0 %v4144_v6  ;;  %v476_v35 = vand.u32 4294901760, %v4176_v23  ;;  %v465_v42 = vsub.f32 %v4170_v21, %v464_v29  ;;  %v482_v45 = vand.u32 4294901760, %v4190_v31  ;;  %s3540_s8 = sshll.u32 %s3536_s20, 4  ;;  %s3526_s25 = scalar_lea.sflag [#allocation4], %s4118_s16  ;;  %s3541_s8 = int_to_ptr.hbm [resolvable:$true] %s3540_s8 }
  0x3f   : > { %v323_v28 = vmul.f32 128.0, %v4154_v16  ;;  %v447_v32 = vsub.f32 %v4157_v17, %v446_v25  ;;  %v453_v33 = vsub.f32 %v4160_v18, %v452_v26  ;;  %v459_v34 = vsub.f32 %v4163_v19, %v458_v27  ;;  %550 = vmatpush.msra.mxu2 %v4160_v18  ;;  %604 = vmatpush.msra.mxu3 %v4146_v7  ;;  %s3907_s29 = scalar_lea.hbm %s5103_s6, 16 }
  0x40   : > { %408 = vmatpush.msra.mxu0 %v4146_v7  ;;  %v471_v44 = vsub.f32 %v4173_v22, %v470_v30  ;;  %v4219_v48 = vand.u32 4294901760, %v376_v37  ;;  %v4221_v49 = vand.u32 4294901760, %v373_v38  ;;  %v4223_v50 = vand.u32 4294901760, %v370_v39 }
  0x41   : > { %v448_v40 = vand.u32 4294901760, %v447_v32  ;;  %v454_v41 = vand.u32 4294901760, %v453_v33  ;;  %553 = vmatpush.msra.mxu2 %v4163_v19  ;;  %606 = vmatpush.msra.mxu3 %v4148_v11  ;;  %v324_v43 = vsub.f32 1.0, %v323_v28  ;;  %v460_v47 = vand.u32 4294901760, %v459_v34  ;;  %v355_v28 = vld [vmem:[#allocation7] sm:$0xff] }
  0x42   : > { %410 = vmatpush.msra.mxu0 %v4148_v11  ;;  %v477_v51 = vsub.f32 %v4176_v23, %v476_v35  ;;  %v488_v52 = vand.u32 4294901760, %v4206_v36  ;;  %v466_v54 = vand.u32 4294901760, %v465_v42  ;;  %v4233_v55 = vsub.f32 %v376_v37, %v4219_v48 }
  0x43   : > { %449 = vmatpush.msra.mxu1 %v448_v40  ;;  %556 = vmatpush.msra.mxu2 %v4170_v21  ;;  %v4236_v56 = vsub.f32 %v373_v38, %v4221_v49  ;;  %v4238_v57 = vand.u32 4294901760, %v367_v46  ;;  %v325_v58 = vmul.f32 %v4154_v16, %v324_v43  ;;  %v483_v59 = vsub.f32 %v4190_v31, %v482_v45 }
  0x44   : > { %608 = vmatpush.msra.mxu3 %v4150_v12  ;;  %412 = vmatpush.msra.mxu0 %v4150_v12  ;;  %v472_v61 = vand.u32 4294901760, %v471_v44  ;;  %v494_v62 = vand.u32 4294901760, %v4233_v55  ;;  %v4249_v63 = vsub.f32 %v370_v39, %v4223_v50  ;;  %v4251_v1 = vand.u32 4294901760, %v364_v53 }
  0x45   : > { %455 = vmatpush.msra.mxu1 %v454_v41  ;;  %559 = vmatpush.msra.mxu2 %v4173_v22  ;;  %v489_v2 = vsub.f32 %v4206_v36, %v488_v52  ;;  %v478_v4 = vand.u32 4294901760, %v477_v51  ;;  %v500_v8 = vand.u32 4294901760, %v4236_v56  ;;  %v4261_v9 = vsub.f32 %v367_v46, %v4238_v57 }
  0x46   : > { %610 = vmatpush.msra.mxu3 %v4152_v13  ;;  %414 = vmatpush.msra.mxu0 %v4152_v13  ;;  %v4263_v10 = vand.u32 4294901760, %v361_v60  ;;  %v326_v14 = vadd.f32 %v4154_v16, %v325_v58  ;;  %vm327_vm0 = vweird.f32 %v4154_v16  ;;  %v484_v15 = vand.u32 4294901760, %v483_v59 }
  0x47   : > { %461 = vmatpush.msra.mxu1 %v460_v47  ;;  %562 = vmatpush.msra.mxu2 %v4176_v23  ;;  %v495_v32 = vsub.f32 %v4233_v55, %v494_v62  ;;  %v506_v33 = vand.u32 4294901760, %v4249_v63  ;;  %v4275_v34 = vsub.f32 %v364_v53, %v4251_v1  ;;  %v4277_v37 = vand.u32 4294901760, %v358_v3 }
  0x48   : > { %612 = vmatpush.msra.mxu3 %v4167_v20  ;;  %416 = vmatpush.msra.mxu0 %v4167_v20  ;;  %v490_v38 = vand.u32 4294901760, %v489_v2  ;;  %v501_v39 = vsub.f32 %v4236_v56, %v500_v8  ;;  %v512_v40 = vand.u32 4294901760, %v4261_v9  ;;  %v4287_v41 = vsub.f32 %v361_v60, %v4263_v10 }
  0x49   : > { %467 = vmatpush.msra.mxu1 %v466_v54  ;;  %565 = vmatpush.msra.mxu2 %v4190_v31  ;;  %v4289_v42 = vand.u32 4294901760, %v355_v28  ;;  %v4294_v43 = vsel %vm327_vm0, %v4154_v16, %v326_v14  ;;  %v496_v44 = vand.u32 4294901760, %v495_v32  ;;  %v507_v46 = vsub.f32 %v4249_v63, %v506_v33 }
  0x4a   : > { %614 = vmatpush.msra.mxu3 %v4178_v24  ;;  %418 = vmatpush.msra.mxu0 %v4178_v24  ;;  %v518_v47 = vand.u32 4294901760, %v4275_v34  ;;  %v4304_v51 = vsub.f32 %v358_v3, %v4277_v37  ;;  %v502_v53 = vand.u32 4294901760, %v501_v39  ;;  %v513_v54 = vsub.f32 %v4261_v9, %v512_v40 }
  0x4b   : > { %473 = vmatpush.msra.mxu1 %v472_v61  ;;  %568 = vmatpush.msra.mxu2 %v4206_v36  ;;  %v524_v58 = vand.u32 4294901760, %v4287_v41  ;;  %v4314_v59 = vsub.f32 %v355_v28, %v4289_v42  ;;  %v508_v61 = vand.u32 4294901760, %v507_v46 }
  0x4c   : > { %616 = vmatpush.msra.mxu3 %v4219_v48  ;;  %420 = vmatpush.msra.mxu0 %v4219_v48  ;;  %v519_v2 = vsub.f32 %v4275_v34, %v518_v47  ;;  %v530_v3 = vand.u32 4294901760, %v4304_v51  ;;  %v514_v14 = vand.u32 4294901760, %v513_v54 }
  0x4d   : > { %479 = vmatpush.msra.mxu1 %v478_v4  ;;  %571 = vmatpush.msra.mxu2 %v4233_v55  ;;  %v536_v28 = vand.u32 4294901760, %v4314_v59 }
  0x4e   : > { %618 = vmatpush.msra.mxu3 %v4221_v49  ;;  %422 = vmatpush.msra.mxu0 %v4221_v49 }
  0x4f   : > { %485 = vmatpush.msra.mxu1 %v484_v15  ;;  %574 = vmatpush.msra.mxu2 %v4236_v56  ;;  %v525_v15 = vsub.f32 %v4287_v41, %v524_v58 }
  0x50   : > { %620 = vmatpush.msra.mxu3 %v4223_v50  ;;  %424 = vmatpush.msra.mxu0 %v4223_v50 }
  0x51   : > { %491 = vmatpush.msra.mxu1 %v490_v38  ;;  %577 = vmatpush.msra.mxu2 %v4249_v63  ;;  %v531_v38 = vsub.f32 %v4304_v51, %v530_v3  ;;  %v526_v39 = vand.u32 4294901760, %v525_v15 }
  0x52   : > { %622 = vmatpush.msra.mxu3 %v4238_v57  ;;  %426 = vmatpush.msra.mxu0 %v4238_v57 }
  0x53   : > { %497 = vmatpush.msra.mxu1 %v496_v44  ;;  %580 = vmatpush.msra.mxu2 %v4261_v9  ;;  %v537_v44 = vsub.f32 %v4314_v59, %v536_v28  ;;  %v532_v46 = vand.u32 4294901760, %v531_v38 }
  0x54   : > { %624 = vmatpush.msra.mxu3 %v4251_v1  ;;  %428 = vmatpush.msra.mxu0 %v4251_v1 }
  0x55   : > { %503 = vmatpush.msra.mxu1 %v502_v53  ;;  %583 = vmatpush.msra.mxu2 %v4275_v34  ;;  %v374_v53 = vld [vmem:[#allocation7 + $0x98] sm:$0xff] }
  0x56   : > { %626 = vmatpush.msra.mxu3 %v4263_v10  ;;  %430 = vmatpush.msra.mxu0 %v4263_v10 }
  0x57   : > { %509 = vmatpush.msra.mxu1 %v508_v61  ;;  %586 = vmatpush.msra.mxu2 %v4287_v41 }
  0x58   : > { %628 = vmatpush.msra.mxu3 %v4277_v37  ;;  %432 = vmatpush.msra.mxu0 %v4277_v37 }
  0x59   : > { %515 = vmatpush.msra.mxu1 %v514_v14  ;;  %589 = vmatpush.msra.mxu2 %v4304_v51 }
  0x5a   : > { %630 = vmatpush.msra.mxu3 %v4289_v42  ;;  %434 = vmatpush.msra.mxu0 %v4289_v42 }
  0x5b   : > { %592 = vmatpush.msra.mxu2 %v4314_v59  ;;  %v4470_v59 = vand.u32 4294901760, %v374_v53 }
  0x5c   : > { %641 = vmatpush.msrb.mxu0 %v446_v25  ;;  %v389_v25 = vld [vmem:[#allocation7 + $0x110] sm:$0xff] }
  0x5e   : > { %645 = vmatpush.msrb.mxu0 %v452_v26 }
  0x60   : > { %649 = vmatpush.msrb.mxu0 %v458_v27 }
  0x62   : > { %653 = vmatpush.msrb.mxu0 %v464_v29 }
  0x64   : > { %657 = vmatpush.msrb.mxu0 %v470_v30  ;;  %v4421_v30 = vand.u32 4294901760, %v389_v25 }
  0x66   : > { %661 = vmatpush.msrb.mxu0 %v476_v35  ;;  %v386_v35 = vld [vmem:[#allocation7 + $0xf8] sm:$0xff] }
  0x68   : > { %665 = vmatpush.msrb.mxu0 %v482_v45 }
  0x6a   : > { %669 = vmatpush.msrb.mxu0 %v488_v52  ;;  %v383_v52 = vld [vmem:[#allocation7 + $0xe0] sm:$0xff] }
  0x6c   : > { %673 = vmatpush.msrb.mxu0 %v494_v62 }
  0x6e   : > { %677 = vmatpush.msrb.mxu0 %v500_v8 }
  0x70   : > { %681 = vmatpush.msrb.mxu0 %v506_v33 }
  0x72   : > { %685 = vmatpush.msrb.mxu0 %v512_v40 }
  0x74   : > { %689 = vmatpush.msrb.mxu0 %v518_v47 }
  0x76   : > { %693 = vmatpush.msrb.mxu0 %v524_v58 }
  0x78   : > { %697 = vmatpush.msrb.mxu0 %v530_v3 }
  0x7a   : > { %701 = vmatpush.msrb.mxu0 %v536_v28  ;;  %v4481_v28 = vsub.f32 %v374_v53, %v4470_v59  ;;  %v356_v53 = vld [vmem:[#allocation7 + $0x8] sm:$0xff] }
  0xab   : > { %v321_v16 = vpop.xlane.xlu0 %320 }
  0xac   : > { %v329_v60 = vmul.f32 %v4294_v43, %v321_v16  ;;  %v538_v16 = vand.u32 4294901760, %v537_v44 }
  0xae   : > { %v4325_v4 = vsub.f32 %v4139_v0, %v329_v60  ;;  %v520_v0 = vand.u32 4294901760, %v519_v2  ;;  %v371_v2 = vld [vmem:[#allocation7 + $0x80] sm:$0xff] }
  0xaf   : > { %v4478_v15 = vand.u32 4294901760, %v371_v2 }
  0xb0   : > { %v331_v32 = vmul.f32 %v4325_v4, %v4325_v4  ;;  %521 = vmatpush.msra.mxu1 %v520_v0  ;;  %v368_v0 = vld [vmem:[#allocation7 + $0x68] sm:$0xff] }
  0xb1   : > { %v4491_v44 = vand.u32 4294901760, %v368_v0 }
  0xb2   : > { %332 = vadd.xlane.f32.xlu0 %v331_v32  ;;  %527 = vmatpush.msra.mxu1 %v526_v39  ;;  %v841_v39 = vand.u32 4294901760, %v4481_v28 }
  0xb4   : > { %533 = vmatpush.msra.mxu1 %v532_v46  ;;  %v4494_v46 = vsub.f32 %v371_v2, %v4478_v15 }
  0xb6   : > { %539 = vmatpush.msra.mxu1 %v538_v16 }
  0xb8   : > { %708 = vmatpush.msrb.mxu1 %v4142_v5  ;;  %v401_v5 = vld [vmem:[#allocation7 + $0x170] sm:$0xff] }
  0xba   : > { %710 = vmatpush.msrb.mxu1 %v4144_v6  ;;  %v4391_v6 = vand.u32 4294901760, %v401_v5 }
  0xbc   : > { %712 = vmatpush.msrb.mxu1 %v4146_v7  ;;  %v398_v7 = vld [vmem:[#allocation7 + $0x158] sm:$0xff]  ;;  %745 = vmatpush.msrb.mxu2 %v4391_v6 }
  0xbe   : > { %714 = vmatpush.msrb.mxu1 %v4148_v11  ;;  %v4394_v11 = vand.u32 4294901760, %v398_v7 }
  0xc0   : > { %716 = vmatpush.msrb.mxu1 %v4150_v12  ;;  %v4397_v12 = vsub.f32 %v401_v5, %v4391_v6  ;;  %747 = vmatpush.msrb.mxu2 %v4394_v11  ;;  %v4404_v19 = vsub.f32 %v398_v7, %v4394_v11  ;;  %v365_v5 = vld [vmem:[#allocation7 + $0x50] sm:$0xff] }
  0xc2   : > { %718 = vmatpush.msrb.mxu1 %v4152_v13  ;;  %v395_v13 = vld [vmem:[#allocation7 + $0x140] sm:$0xff]  ;;  %v787_v17 = vand.u32 4294901760, %v4397_v12  ;;  %v793_v22 = vand.u32 4294901760, %v4404_v19 }
  0xc3   : > { %v4401_v18 = vand.u32 4294901760, %v395_v13 }
  0xc4   : > { %720 = vmatpush.msrb.mxu1 %v4167_v20  ;;  %v392_v20 = vld [vmem:[#allocation7 + $0x128] sm:$0xff]  ;;  %v788_v21 = vsub.f32 %v4397_v12, %v787_v17  ;;  %v794_v27 = vsub.f32 %v4404_v19, %v793_v22 }
  0xc5   : > { %749 = vmatpush.msrb.mxu2 %v4401_v18  ;;  %v4411_v23 = vand.u32 4294901760, %v392_v20 }
  0xc6   : > { %722 = vmatpush.msrb.mxu1 %v4178_v24  ;;  %v4414_v24 = vsub.f32 %v395_v13, %v4401_v18  ;;  %v789_v26 = vand.u32 4294901760, %v788_v21  ;;  %v795_v36 = vand.u32 4294901760, %v794_v27  ;;  %v842_v13 = vsub.f32 %v4481_v28, %v841_v39 }
  0xc7   : > { %751 = vmatpush.msrb.mxu2 %v4411_v23  ;;  %v4424_v31 = vsub.f32 %v392_v20, %v4411_v23  ;;  %v847_v20 = vand.u32 4294901760, %v4494_v46  ;;  %v4501_v21 = vand.u32 4294901760, %v365_v5 }
  0xc8   : > { %724 = vmatpush.msrb.mxu1 %v4219_v48  ;;  %v799_v29 = vand.u32 4294901760, %v4414_v24  ;;  %790 = vmatpush.msrb.mxu3 %v789_v26  ;;  %v4430_v48 = vand.u32 4294901760, %v386_v35  ;;  %v362_v26 = vld [vmem:[#allocation7 + $0x38] sm:$0xff]  ;;  %v843_v27 = vand.u32 4294901760, %v842_v13 }
  0xc9   : > { %753 = vmatpush.msrb.mxu2 %v4421_v30 }
  0xca   : > { %726 = vmatpush.msrb.mxu1 %v4221_v49  ;;  %v800_v45 = vsub.f32 %v4414_v24, %v799_v29  ;;  %v4433_v49 = vsub.f32 %v389_v25, %v4421_v30  ;;  %796 = vmatpush.msrb.mxu3 %v795_v36  ;;  %v4441_v62 = vsub.f32 %v386_v35, %v4430_v48  ;;  %v4510_v36 = vand.u32 4294901760, %v362_v26 }
  0xcb   : > { %755 = vmatpush.msrb.mxu2 %v4430_v48  ;;  %v4504_v25 = vsub.f32 %v368_v0, %v4491_v44  ;;  %v848_v35 = vsub.f32 %v4494_v46, %v847_v20 }
  0xcc   : > { %728 = vmatpush.msrb.mxu1 %v4223_v50  ;;  %v805_v50 = vand.u32 4294901760, %v4424_v31  ;;  %v801_v55 = vand.u32 4294901760, %v800_v45  ;;  %v811_v56 = vand.u32 4294901760, %v4433_v49  ;;  %v817_v9 = vand.u32 4294901760, %v4441_v62 }
  0xcd   : > { %v4513_v45 = vsub.f32 %v365_v5, %v4501_v21 }
  0xce   : > { %730 = vmatpush.msrb.mxu1 %v4238_v57  ;;  %v4438_v57 = vand.u32 4294901760, %v383_v52  ;;  %v806_v63 = vsub.f32 %v4424_v31, %v805_v50  ;;  %802 = vmatpush.msrb.mxu3 %v801_v55  ;;  %v812_v8 = vsub.f32 %v4433_v49, %v811_v56  ;;  %v818_v41 = vsub.f32 %v4441_v62, %v817_v9  ;;  %v359_v55 = vld [vmem:[#allocation7 + $0x20] sm:$0xff] }
  0xd0   : > { %732 = vmatpush.msrb.mxu1 %v4251_v1  ;;  %v380_v1 = vld [vmem:[#allocation7 + $0xc8] sm:$0xff]  ;;  %757 = vmatpush.msrb.mxu2 %v4438_v57  ;;  %v4454_v33 = vsub.f32 %v383_v52, %v4438_v57  ;;  %v807_v34 = vand.u32 4294901760, %v806_v63  ;;  %v813_v40 = vand.u32 4294901760, %v812_v8  ;;  %v819_v54 = vand.u32 4294901760, %v818_v41 }
  0xd1   : > { %v853_v52 = vand.u32 4294901760, %v4504_v25  ;;  %v849_v63 = vand.u32 4294901760, %v848_v35  ;;  %v4518_v8 = vand.u32 4294901760, %v359_v55 }
  0xd2   : > { %734 = vmatpush.msrb.mxu1 %v4263_v10  ;;  %v4451_v10 = vand.u32 4294901760, %v380_v1  ;;  %808 = vmatpush.msrb.mxu3 %v807_v34  ;;  %v4521_v34 = vsub.f32 %v362_v26, %v4510_v36 }
  0xd3   : > { %v4534_v2 = vsub.f32 %v359_v55, %v4518_v8 }
  0xd4   : > { %736 = vmatpush.msrb.mxu1 %v4277_v37  ;;  %v377_v37 = vld [vmem:[#allocation7 + $0xb0] sm:$0xff]  ;;  %759 = vmatpush.msrb.mxu2 %v4451_v10  ;;  %v4464_v51 = vsub.f32 %v380_v1, %v4451_v10  ;;  %v859_v1 = vand.u32 4294901760, %v4513_v45  ;;  %v865_v41 = vand.u32 4294901760, %v4521_v34 }
  0xd5   : > { %v4461_v47 = vand.u32 4294901760, %v377_v37  ;;  %814 = vmatpush.msrb.mxu3 %v813_v40  ;;  %v871_v0 = vand.u32 4294901760, %v4534_v2 }
  0xd6   : > { %738 = vmatpush.msrb.mxu1 %v4289_v42  ;;  %v823_v42 = vand.u32 4294901760, %v4454_v33  ;;  %v829_v61 = vand.u32 4294901760, %v4464_v51  ;;  %v860_v40 = vsub.f32 %v4513_v45, %v859_v1 }
  0xd7   : > { %761 = vmatpush.msrb.mxu2 %v4461_v47  ;;  %v4473_v60 = vsub.f32 %v377_v37, %v4461_v47  ;;  %820 = vmatpush.msrb.mxu3 %v819_v54  ;;  %v854_v37 = vsub.f32 %v4504_v25, %v853_v52  ;;  %v872_v5 = vsub.f32 %v4534_v2, %v871_v0 }
  0xd8   : > { %v824_v58 = vsub.f32 %v4454_v33, %v823_v42  ;;  %v830_v32 = vsub.f32 %v4464_v51, %v829_v61 }
  0xd9   : > { %763 = vmatpush.msrb.mxu2 %v4470_v59  ;;  %v835_v14 = vand.u32 4294901760, %v4473_v60  ;;  %v855_v54 = vand.u32 4294901760, %v854_v37  ;;  %v873_v13 = vand.u32 4294901760, %v872_v5 }
  0xda   : > { %v825_v3 = vand.u32 4294901760, %v824_v58  ;;  %v831_v16 = vand.u32 4294901760, %v830_v32  ;;  %v4531_v58 = vand.u32 4294901760, %v356_v53  ;;  %v866_v32 = vsub.f32 %v4521_v34, %v865_v41 }
  0xdb   : > { %v836_v38 = vsub.f32 %v4473_v60, %v835_v14  ;;  %765 = vmatpush.msrb.mxu2 %v4478_v15 }
  0xdc   : > { %826 = vmatpush.msrb.mxu3 %v825_v3  ;;  %v861_v3 = vand.u32 4294901760, %v860_v40 }
  0xdd   : > { %v837_v7 = vand.u32 4294901760, %v836_v38  ;;  %767 = vmatpush.msrb.mxu2 %v4491_v44  ;;  %v4542_v38 = vsub.f32 %v356_v53, %v4531_v58 }
  0xde   : > { %832 = vmatpush.msrb.mxu3 %v831_v16  ;;  %v867_v16 = vand.u32 4294901760, %v866_v32 }
  0xdf   : > { %769 = vmatpush.msrb.mxu2 %v4501_v21 }
  0xe0   : > { %838 = vmatpush.msrb.mxu3 %v837_v7  ;;  %v877_v7 = vand.u32 4294901760, %v4542_v38 }
  0xe1   : > { %771 = vmatpush.msrb.mxu2 %v4510_v36 }
  0xe2   : > { %844 = vmatpush.msrb.mxu3 %v843_v27  ;;  %v878_v26 = vsub.f32 %v4542_v38, %v877_v7 }
  0xe3   : > { %773 = vmatpush.msrb.mxu2 %v4518_v8 }
  0xe4   : > { %850 = vmatpush.msrb.mxu3 %v849_v63  ;;  %v879_v55 = vand.u32 4294901760, %v878_v26 }
  0xe5   : > { %775 = vmatpush.msrb.mxu2 %v4531_v58 }
  0xe6   : > { %856 = vmatpush.msrb.mxu3 %v855_v54 }
  0xe8   : > { %862 = vmatpush.msrb.mxu3 %v861_v3 }
  0xea   : > { %868 = vmatpush.msrb.mxu3 %v867_v16  ;;  %v3743_v16 = vld [vmem:[#allocation5] ss:$0 sm:$0xff] }
  0xec   : > { %874 = vmatpush.msrb.mxu3 %v873_v13 }
  0xee   : > { %880 = vmatpush.msrb.mxu3 %v879_v55 }
 0x125   : > { %v333_v27 = vpop.xlane.xlu0 %332 }
 0x126   : > { %v334_v35 = vmul.f32 %v333_v27, %v4294_v43  ;;  %v3744_v43 = vld [vmem:[%s5099_s2] ss:$0 sm:$0xff] }
 0x128   : > { %v335_v63 = vadd.f32 1e-05, %v334_v35 }
 0x12a   : > { %3748 = vrsqrt.f32 %v335_v63  ;;  %vm342_vm2 = vweird.f32 %v335_v63 }
 0x130   : > { %v3749_v37 = vpop.eup %3748 }
 0x131   : > { %v337_v40 = vmul.f32 %v3749_v37, %v335_v63  ;;  %vm343_vm1 = vweird.f32 %v3749_v37 }
 0x132   : > { %vm344_vm3 = vmor %vm342_vm2, %vm343_vm1 }
 0x133   : > { %v338_v53 = vmul.f32 %v3749_v37, %v337_v40  ;;  %v372_v40 = vld [vmem:[#allocation7 + $0x88] sm:$0xff] }
 0x135   : > { %v339_v54 = vmul.f32 0.5, %v338_v53 }
 0x137   : > { %v340_v3 = vsub.f32 1.5, %v339_v54 }
 0x139   : > { %v341_v32 = vmul.f32 %v3749_v37, %v340_v3  ;;  %v369_v3 = vld [vmem:[#allocation7 + $0x70] sm:$0xff] }
 0x13b   : > { %v345_v5 = vsel %vm344_vm3, %v3749_v37, %v341_v32  ;;  %v4723_v32 = vand.u32 4294901760, %v372_v40 }
 0x13c   : > { %v346_v13 = vmul.f32 %v345_v5, %v4325_v4  ;;  %v366_v5 = vld [vmem:[#allocation7 + $0x58] sm:$0xff] }
 0x13e   : > { %v350_v26 = vmul.f32 %v3743_v16, %v346_v13  ;;  %v4735_v13 = vand.u32 4294901760, %v369_v3 }
 0x140   : > { %v354_v27 = vadd.f32 %v3744_v43, %v350_v26 }
 0x142   : > { %v4556_v35 = vand.u32 4294901760, %v354_v27 }
 0x144   : > { %541 = vmatmul.f32.vlgmr.msra.gmra.mxu1 %v4556_v35  ;;  %v4560_v55 = vsub.f32 %v354_v27, %v4556_v35 }
 0x145   : > { %941 = vmatpush.msra.mxu1 %v4391_v6 }
 0x146   : > { %595 = vmatmul.f32.vlgmr.msra.gmra.mxu2 %v4560_v55  ;;  %v4565_v63 = vand.u32 4294901760, %v4560_v55 }
 0x147   : > { %943 = vmatpush.msra.mxu1 %v4394_v11  ;;  %982 = vmatpush.msra.mxu2 %v787_v17  ;;  %v396_v17 = vld [vmem:[#allocation7 + $0x148] sm:$0xff] }
 0x148   : > { %634 = vmatmul.f32.vlgmr.msra.gmra.mxu3 %v4565_v63  ;;  %v438_v4 = vsub.f32 %v4560_v55, %v4565_v63 }
 0x149   : > { %945 = vmatpush.msra.mxu1 %v4401_v18  ;;  %986 = vmatpush.msra.mxu2 %v793_v22 }
 0x14a   : > { %1049 = vmatpush.msra.mxu3 %v4391_v6  ;;  %v4577_v37 = vand.u32 4294901760, %v438_v4  ;;  %v402_v6 = vld [vmem:[#allocation7 + $0x178] sm:$0xff]  ;;  %v4745_v4 = vsub.f32 %v372_v40, %v4723_v32 }
 0x14b   : > { %947 = vmatpush.msra.mxu1 %v4411_v23  ;;  %990 = vmatpush.msra.mxu2 %v799_v29 }
 0x14c   : > { %1051 = vmatpush.msra.mxu3 %v4394_v11  ;;  %440 = vmatmul.f32.vlgmr.msra.gmra.mxu0 %v4577_v37  ;;  %v399_v11 = vld [vmem:[#allocation7 + $0x160] sm:$0xff] }
 0x14d   : > { %740 = vmatmul.f32.vlgmr.msrb.gmra.mxu1 %v4556_v35  ;;  %888 = vmatpush.msra.mxu0 %v4397_v12  ;;  %v4603_v12 = vand.u32 4294901760, %v402_v6 }
 0x14e   : > { %949 = vmatpush.msra.mxu1 %v4421_v30  ;;  %994 = vmatpush.msra.mxu2 %v805_v50  ;;  %v387_v50 = vld [vmem:[#allocation7 + $0x100] sm:$0xff] }
 0x14f   : > { %1053 = vmatpush.msra.mxu3 %v4401_v18  ;;  %781 = vmatmul.f32.vlgmr.msrb.gmra.mxu2 %v4577_v37  ;;  %v4610_v18 = vand.u32 4294901760, %v399_v11  ;;  %v4618_v22 = vsub.f32 %v402_v6, %v4603_v12  ;;  %v4747_v6 = vand.u32 4294901760, %v366_v5 }
 0x150   : > { %891 = vmatpush.msra.mxu0 %v4404_v19  ;;  %951 = vmatpush.msra.mxu1 %v4430_v48  ;;  %v393_v19 = vld [vmem:[#allocation7 + $0x130] sm:$0xff] }
 0x151   : > { %998 = vmatpush.msra.mxu2 %v811_v56  ;;  %1055 = vmatpush.msra.mxu3 %v4411_v23  ;;  %v4620_v23 = vand.u32 4294901760, %v396_v17  ;;  %v4628_v29 = vsub.f32 %v399_v11, %v4610_v18  ;;  %v384_v56 = vld [vmem:[#allocation7 + $0xe8] sm:$0xff] }
 0x152   : > { %882 = vmatmul.f32.vlgmr.msrb.gmra.mxu3 %v4556_v35  ;;  %894 = vmatpush.msra.mxu0 %v4414_v24  ;;  %v390_v24 = vld [vmem:[#allocation7 + $0x118] sm:$0xff] }
 0x153   : > { %953 = vmatpush.msra.mxu1 %v4438_v57  ;;  %1002 = vmatpush.msra.mxu2 %v817_v9  ;;  %v4654_v9 = vand.u32 4294901760, %v387_v50 }
 0x154   : > { %1057 = vmatpush.msra.mxu3 %v4421_v30  ;;  %897 = vmatpush.msra.mxu0 %v4424_v31  ;;  %v4630_v30 = vand.u32 4294901760, %v393_v19  ;;  %v1128_v31 = vand.u32 4294901760, %v4618_v22 }
 0x155   : > { %955 = vmatpush.msra.mxu1 %v4451_v10  ;;  %1006 = vmatpush.msra.mxu2 %v823_v42 }
 0x156   : > { %1059 = vmatpush.msra.mxu3 %v4430_v48  ;;  %703 = vmatmul.f32.vlgmr.msrb.gmra.mxu0 %v4556_v35  ;;  %v4639_v48 = vsub.f32 %v396_v17, %v4620_v23  ;;  %v360_v17 = vld [vmem:[#allocation7 + $0x28] sm:$0xff] }
 0x157   : > { %900 = vmatpush.msra.mxu0 %v4433_v49  ;;  %957 = vmatpush.msra.mxu1 %v4461_v47  ;;  %v4641_v49 = vand.u32 4294901760, %v390_v24 }
 0x158   : > { %1010 = vmatpush.msra.mxu2 %v829_v61  ;;  %1061 = vmatpush.msra.mxu3 %v4438_v57  ;;  %v1134_v57 = vand.u32 4294901760, %v4628_v29  ;;  %v1140_v42 = vand.u32 4294901760, %v4639_v48 }
 0x159   : > { %903 = vmatpush.msra.mxu0 %v4441_v62  ;;  %959 = vmatpush.msra.mxu1 %v4470_v59  ;;  %v4650_v62 = vsub.f32 %v393_v19, %v4630_v30 }
 0x15a   : > { %1014 = vmatpush.msra.mxu2 %v835_v14  ;;  %1063 = vmatpush.msra.mxu3 %v4451_v10  ;;  %v381_v10 = vld [vmem:[#allocation7 + $0xd0] sm:$0xff]  ;;  %v378_v14 = vld [vmem:[#allocation7 + $0xb8] sm:$0xff] }
 0x15b   : > { %906 = vmatpush.msra.mxu0 %v4454_v33  ;;  %961 = vmatpush.msra.mxu1 %v4478_v15  ;;  %v1129_v33 = vsub.f32 %v4618_v22, %v1128_v31  ;;  %v4677_v61 = vand.u32 4294901760, %v381_v10 }
 0x15c   : > { %1018 = vmatpush.msra.mxu2 %v841_v39  ;;  %1065 = vmatpush.msra.mxu3 %v4461_v47  ;;  %v4664_v47 = vsub.f32 %v390_v24, %v4641_v49  ;;  %v1141_v39 = vsub.f32 %v4639_v48, %v1140_v42 }
 0x15d   : > { %909 = vmatpush.msra.mxu0 %v4464_v51  ;;  %963 = vmatpush.msra.mxu1 %v4491_v44  ;;  %v4666_v51 = vand.u32 4294901760, %v384_v56 }
 0x15e   : > { %1022 = vmatpush.msra.mxu2 %v847_v20  ;;  %1067 = vmatpush.msra.mxu3 %v4470_v59  ;;  %v1135_v59 = vsub.f32 %v4628_v29, %v1134_v57 }
 0x15f   : > { %912 = vmatpush.msra.mxu0 %v4473_v60  ;;  %965 = vmatpush.msra.mxu1 %v4501_v21  ;;  %v1146_v60 = vand.u32 4294901760, %v4650_v62  ;;  %v4692_v20 = vsub.f32 %v384_v56, %v4666_v51 }
 0x160   : > { %1026 = vmatpush.msra.mxu2 %v853_v52  ;;  %1069 = vmatpush.msra.mxu3 %v4478_v15  ;;  %v4682_v15 = vsub.f32 %v387_v50, %v4654_v9  ;;  %v4696_v52 = vand.u32 4294901760, %v378_v14  ;;  %v4757_v50 = vsub.f32 %v369_v3, %v4735_v13 }
 0x161   : > { %915 = vmatpush.msra.mxu0 %v4481_v28  ;;  %967 = vmatpush.msra.mxu1 %v4510_v36  ;;  %v1130_v28 = vand.u32 4294901760, %v1129_v33  ;;  %v1164_v54 = vand.u32 4294901760, %v4692_v20 }
 0x162   : > { %1030 = vmatpush.msra.mxu2 %v859_v1  ;;  %1071 = vmatpush.msra.mxu3 %v4491_v44  ;;  %v1152_v44 = vand.u32 4294901760, %v4664_v47  ;;  %v1147_v1 = vsub.f32 %v4650_v62, %v1146_v60 }
 0x163   : > { %918 = vmatpush.msra.mxu0 %v4494_v46  ;;  %969 = vmatpush.msra.mxu1 %v4518_v8  ;;  %v375_v46 = vld [vmem:[#allocation7 + $0xa0] sm:$0xff]  ;;  %v1165_v27 = vsub.f32 %v4692_v20, %v1164_v54 }
 0x164   : > { %1034 = vmatpush.msra.mxu2 %v865_v41  ;;  %1073 = vmatpush.msra.mxu3 %v4501_v21  ;;  %v1136_v21 = vand.u32 4294901760, %v1135_v59  ;;  %v4705_v41 = vsub.f32 %v381_v10, %v4677_v61  ;;  %v4710_v53 = vand.u32 4294901760, %v375_v46  ;;  %v357_v10 = vld [vmem:[#allocation7 + $0x10] sm:$0xff]  ;;  %v1188_v59 = vand.u32 4294901760, %v4745_v4 }
 0x165   : > { %921 = vmatpush.msra.mxu0 %v4504_v25  ;;  %971 = vmatpush.msra.mxu1 %v4531_v58  ;;  %v1158_v25 = vand.u32 4294901760, %v4682_v15 }
 0x166   : > { %1038 = vmatpush.msra.mxu2 %v871_v0  ;;  %1075 = vmatpush.msra.mxu3 %v4510_v36  ;;  %v1142_v36 = vand.u32 4294901760, %v1141_v39  ;;  %v1153_v0 = vsub.f32 %v4664_v47, %v1152_v44  ;;  %v1170_v16 = vand.u32 4294901760, %v4705_v41  ;;  %v4733_v43 = vsub.f32 %v375_v46, %v4710_v53 }
 0x167   : > { %975 = vmatmul.f32.vlgmr.msra.gmra.mxu1 %v4565_v63  ;;  %924 = vmatpush.msra.mxu0 %v4513_v45  ;;  %v4721_v45 = vsub.f32 %v378_v14, %v4696_v52  ;;  %v4769_v14 = vsub.f32 %v366_v5, %v4747_v6  ;;  %v1194_v46 = vand.u32 4294901760, %v4757_v50 }
 0x168   : > { %1131 = vmatpush.msrb.mxu1 %v1130_v28  ;;  %1042 = vmatpush.msra.mxu2 %v877_v7  ;;  %v1148_v7 = vand.u32 4294901760, %v1147_v1  ;;  %v1154_v26 = vand.u32 4294901760, %v1153_v0  ;;  %v1171_v11 = vsub.f32 %v4705_v41, %v1170_v16  ;;  %v1182_v24 = vand.u32 4294901760, %v4733_v43 }
 0x169   : > { %1077 = vmatpush.msra.mxu3 %v4518_v8  ;;  %1044 = vmatmul.f32.vlgmr.msra.gmra.mxu2 %v4556_v35  ;;  %v1159_v8 = vsub.f32 %v4682_v15, %v1158_v25  ;;  %v4771_v28 = vand.u32 4294901760, %v360_v17  ;;  %v4783_v1 = vand.u32 4294901760, %v357_v10  ;;  %v1200_v0 = vand.u32 4294901760, %v4769_v14 }
 0x16a   : > { %1137 = vmatpush.msrb.mxu1 %v1136_v21  ;;  %1229 = vmatpush.msrb.mxu2 %v4618_v22  ;;  %v1183_v39 = vsub.f32 %v4733_v43, %v1182_v24  ;;  %v1195_v5 = vsub.f32 %v4757_v50, %v1194_v46 }
 0x16b   : > { %927 = vmatpush.msra.mxu0 %v4521_v34  ;;  %1079 = vmatpush.msra.mxu3 %v4531_v58  ;;  %v363_v34 = vld [vmem:[#allocation7 + $0x40] sm:$0xff]  ;;  %v1176_v58 = vand.u32 4294901760, %v4721_v45  ;;  %v1160_v19 = vand.u32 4294901760, %v1159_v8  ;;  %v4793_v3 = vsub.f32 %v360_v17, %v4771_v28 }
 0x16c   : > { %1081 = vmatmul.f32.vlgmr.msra.gmra.mxu3 %v4556_v35  ;;  %1143 = vmatpush.msrb.mxu1 %v1142_v36  ;;  %v4759_v56 = vand.u32 4294901760, %v363_v34  ;;  %v1189_v36 = vsub.f32 %v4745_v4, %v1188_v59  ;;  %v1196_v17 = vand.u32 4294901760, %v1195_v5 }
 0x16d   : > { %1232 = vmatpush.msrb.mxu2 %v4628_v29  ;;  %1282 = vmatpush.msrb.mxu3 %v4603_v12  ;;  %v1177_v33 = vsub.f32 %v4721_v45, %v1176_v58 }
 0x16e   : > { %930 = vmatpush.msra.mxu0 %v4534_v2  ;;  %1149 = vmatpush.msrb.mxu1 %v1148_v7  ;;  %v1166_v2 = vand.u32 4294901760, %v1165_v27  ;;  %v4781_v21 = vsub.f32 %v363_v34, %v4759_v56  ;;  %v1184_v7 = vand.u32 4294901760, %v1183_v39  ;;  %v1190_v27 = vand.u32 4294901760, %v1189_v36 }
 0x16f   : > { %1235 = vmatpush.msrb.mxu2 %v4639_v48  ;;  %1284 = vmatpush.msrb.mxu3 %v4610_v18  ;;  %v1178_v40 = vand.u32 4294901760, %v1177_v33  ;;  %v1201_v34 = vsub.f32 %v4769_v14, %v1200_v0 }
 0x170   : > { %933 = vmatpush.msra.mxu0 %v4542_v38  ;;  %1155 = vmatpush.msrb.mxu1 %v1154_v26  ;;  %v1172_v38 = vand.u32 4294901760, %v1171_v11  ;;  %v1206_v8 = vand.u32 4294901760, %v4781_v21  ;;  %v4803_v26 = vsub.f32 %v357_v10, %v4783_v1  ;;  %v1212_v11 = vand.u32 4294901760, %v4793_v3 }
 0x171   : > { %936 = vmatmul.f32.vlgmr.msra.gmra.mxu0 %v4560_v55  ;;  %1238 = vmatpush.msrb.mxu2 %v4650_v62  ;;  %v1202_v10 = vand.u32 4294901760, %v1201_v34 }
 0x172   : > { %1086 = vmatpush.msrb.mxu0 %v4603_v12  ;;  %1286 = vmatpush.msrb.mxu3 %v4620_v23  ;;  %v1213_v33 = vsub.f32 %v4793_v3, %v1212_v11 }
 0x173   : > { %1161 = vmatpush.msrb.mxu1 %v1160_v19  ;;  %1241 = vmatpush.msrb.mxu2 %v4664_v47  ;;  %v1207_v19 = vsub.f32 %v4781_v21, %v1206_v8 }
 0x174   : > { %1088 = vmatpush.msrb.mxu0 %v4610_v18  ;;  %1288 = vmatpush.msrb.mxu3 %v4630_v30 }
 0x175   : > { %1167 = vmatpush.msrb.mxu1 %v1166_v2  ;;  %1244 = vmatpush.msrb.mxu2 %v4682_v15  ;;  %v1218_v2 = vand.u32 4294901760, %v4803_v26 }
 0x176   : > { %1090 = vmatpush.msrb.mxu0 %v4620_v23  ;;  %1290 = vmatpush.msrb.mxu3 %v4641_v49 }
 0x177   : > { %1173 = vmatpush.msrb.mxu1 %v1172_v38  ;;  %1247 = vmatpush.msrb.mxu2 %v4692_v20  ;;  %v1208_v38 = vand.u32 4294901760, %v1207_v19  ;;  %v1219_v39 = vsub.f32 %v4803_v26, %v1218_v2 }
 0x178   : > { %1092 = vmatpush.msrb.mxu0 %v4630_v30  ;;  %1292 = vmatpush.msrb.mxu3 %v4654_v9 }
 0x179   : > { %1179 = vmatpush.msrb.mxu1 %v1178_v40  ;;  %1250 = vmatpush.msrb.mxu2 %v4705_v41  ;;  %v1214_v40 = vand.u32 4294901760, %v1213_v33  ;;  %v1220_v36 = vand.u32 4294901760, %v1219_v39 }
 0x17a   : > { %1094 = vmatpush.msrb.mxu0 %v4641_v49  ;;  %1294 = vmatpush.msrb.mxu3 %v4666_v51 }
 0x17b   : > { %1185 = vmatpush.msrb.mxu1 %v1184_v7  ;;  %1253 = vmatpush.msrb.mxu2 %v4721_v45 }
 0x17c   : > { %1096 = vmatpush.msrb.mxu0 %v4654_v9  ;;  %1296 = vmatpush.msrb.mxu3 %v4677_v61 }
 0x17d   : > { %1191 = vmatpush.msrb.mxu1 %v1190_v27  ;;  %1256 = vmatpush.msrb.mxu2 %v4733_v43 }
 0x17e   : > { %1098 = vmatpush.msrb.mxu0 %v4666_v51  ;;  %1298 = vmatpush.msrb.mxu3 %v4696_v52 }
 0x17f   : > { %1197 = vmatpush.msrb.mxu1 %v1196_v17  ;;  %1259 = vmatpush.msrb.mxu2 %v4745_v4 }
 0x180   : > { %1100 = vmatpush.msrb.mxu0 %v4677_v61  ;;  %1300 = vmatpush.msrb.mxu3 %v4710_v53 }
 0x181   : > { %1203 = vmatpush.msrb.mxu1 %v1202_v10  ;;  %1262 = vmatpush.msrb.mxu2 %v4757_v50 }
 0x182   : > { %1102 = vmatpush.msrb.mxu0 %v4696_v52  ;;  %1302 = vmatpush.msrb.mxu3 %v4723_v32 }
 0x183   : > { %1209 = vmatpush.msrb.mxu1 %v1208_v38  ;;  %1265 = vmatpush.msrb.mxu2 %v4769_v14 }
 0x184   : > { %1104 = vmatpush.msrb.mxu0 %v4710_v53  ;;  %1304 = vmatpush.msrb.mxu3 %v4735_v13 }
 0x185   : > { %1215 = vmatpush.msrb.mxu1 %v1214_v40  ;;  %1268 = vmatpush.msrb.mxu2 %v4781_v21 }
 0x186   : > { %1106 = vmatpush.msrb.mxu0 %v4723_v32  ;;  %1306 = vmatpush.msrb.mxu3 %v4747_v6 }
 0x187   : > { %1221 = vmatpush.msrb.mxu1 %v1220_v36  ;;  %1271 = vmatpush.msrb.mxu2 %v4793_v3 }
 0x188   : > { %1108 = vmatpush.msrb.mxu0 %v4735_v13  ;;  %1308 = vmatpush.msrb.mxu3 %v4759_v56 }
 0x189   : > { %1223 = vmatmul.f32.vlgmr.msrb.gmra.mxu1 %v4556_v35  ;;  %1274 = vmatpush.msrb.mxu2 %v4803_v26 }
 0x18a   : > { %1390 = vmatpush.msra.mxu1 %v4603_v12  ;;  %1110 = vmatpush.msrb.mxu0 %v4747_v6 }
 0x18b   : > { %1310 = vmatpush.msrb.mxu3 %v4771_v28  ;;  %1277 = vmatmul.f32.vlgmr.msrb.gmra.mxu2 %v4560_v55 }
 0x18c   : > { %1392 = vmatpush.msra.mxu1 %v4610_v18  ;;  %1112 = vmatpush.msrb.mxu0 %v4759_v56 }
 0x18d   : > { %1312 = vmatpush.msrb.mxu3 %v4783_v1 }
 0x18e   : > { %1316 = vmatmul.f32.vlgmr.msrb.gmra.mxu3 %v4565_v63  ;;  %1394 = vmatpush.msra.mxu1 %v4620_v23 }
 0x18f   : > { %1114 = vmatpush.msrb.mxu0 %v4771_v28 }
 0x190   : > { %1396 = vmatpush.msra.mxu1 %v4630_v30 }
 0x191   : > { %1116 = vmatpush.msrb.mxu0 %v4783_v1 }
 0x192   : > { %1122 = vmatmul.f32.vlgmr.msrb.gmra.mxu0 %v4577_v37  ;;  %1398 = vmatpush.msra.mxu1 %v4641_v49 }
 0x193   : > { %1323 = vmatpush.msra.mxu0 %v1128_v31 }
 0x194   : > { %1400 = vmatpush.msra.mxu1 %v4654_v9 }
 0x195   : > { %1327 = vmatpush.msra.mxu0 %v1134_v57 }
 0x196   : > { %1402 = vmatpush.msra.mxu1 %v4666_v51 }
 0x197   : > { %1331 = vmatpush.msra.mxu0 %v1140_v42 }
 0x198   : > { %1404 = vmatpush.msra.mxu1 %v4677_v61 }
 0x199   : > { %1335 = vmatpush.msra.mxu0 %v1146_v60 }
 0x19a   : > { %1406 = vmatpush.msra.mxu1 %v4696_v52 }
 0x19b   : > { %1339 = vmatpush.msra.mxu0 %v1152_v44 }
 0x19c   : > { %1408 = vmatpush.msra.mxu1 %v4710_v53 }
 0x19d   : > { %1343 = vmatpush.msra.mxu0 %v1158_v25 }
 0x19e   : > { %1410 = vmatpush.msra.mxu1 %v4723_v32 }
 0x19f   : > { %1347 = vmatpush.msra.mxu0 %v1164_v54 }
 0x1a0   : > { %1412 = vmatpush.msra.mxu1 %v4735_v13 }
 0x1a1   : > { %1351 = vmatpush.msra.mxu0 %v1170_v16 }
 0x1a2   : > { %1414 = vmatpush.msra.mxu1 %v4747_v6 }
 0x1a3   : > { %1355 = vmatpush.msra.mxu0 %v1176_v58 }
 0x1a4   : > { %1416 = vmatpush.msra.mxu1 %v4759_v56 }
 0x1a5   : > { %1359 = vmatpush.msra.mxu0 %v1182_v24 }
 0x1a6   : > { %1418 = vmatpush.msra.mxu1 %v4771_v28 }
 0x1a7   : > { %1363 = vmatpush.msra.mxu0 %v1188_v59 }
 0x1a8   : > { %1420 = vmatpush.msra.mxu1 %v4783_v1 }
 0x1a9   : > { %1367 = vmatpush.msra.mxu0 %v1194_v46  ;;  %1422 = vmatmul.f32.vlgmr.msra.gmra.mxu1 %v4556_v35 }
 0x1ab   : > { %1371 = vmatpush.msra.mxu0 %v1200_v0 }
 0x1ad   : > { %1375 = vmatpush.msra.mxu0 %v1206_v8 }
 0x1af   : > { %1379 = vmatpush.msra.mxu0 %v1212_v11 }
 0x1b1   : > { %1383 = vmatpush.msra.mxu0 %v1218_v2 }
 0x1b2   : > { %1385 = vmatmul.f32.vlgmr.msra.gmra.mxu0 %v4556_v35 }
 0x1c1   : > { %v542_v63 = vpop.f32.mrf.mxu1 }
 0x1c9   : > { %v441_v55 = vpop.f32.mrf.mxu0  ;;  %v596_v12 = vpop.f32.mrf.mxu2 }
 0x1ca   : > { %v543_v37 = vadd.f32 %v542_v63, %v441_v55  ;;  %v741_v31 = vpop.f32.mrf.mxu1 }
 0x1cb   : > { %v635_v22 = vpop.f32.mrf.mxu3 }
 0x1cc   : > { %v597_v18 = vadd.f32 %v596_v12, %v543_v37 }
 0x1ce   : > { %v636_v29 = vadd.f32 %v635_v22, %v597_v18 }
 0x1d2   : > { %v782_v57 = vpop.f32.mrf.mxu2 }
 0x1d3   : > { %v704_v23 = vpop.f32.mrf.mxu0 }
 0x1d4   : > { %v705_v30 = vadd.f32 %v704_v23, %v636_v29 }
 0x1d5   : > { %v883_v62 = vpop.f32.mrf.mxu3 }
 0x1d6   : > { %v4906_v48 = vadd.f32 %v741_v31, %v705_v30  ;;  %v884_v35 = vadd.f32 %v883_v62, %v782_v57 }
 0x1d8   : > { %v1444_v49 = vsel %vm1442_vm4, %v4906_v48, 0 }
 0x1d9   : > { %v1466_v9 = vand.u32 4294901760, %v1444_v49 }
 0x1db   : > { %v1467_v47 = vsub.f32 %v1444_v49, %v1466_v9 }
 0x1dd   : > { %v1468_v20 = vand.u32 4294901760, %v1467_v47 }
 0x1df   : > { %v1469_v53 = vsub.f32 %v1467_v47, %v1468_v20 }
 0x1e1   : > { %v1470_v32 = vand.u32 4294901760, %v1469_v53 }
 0x1e4   : > { %v976_v60 = vpop.f32.mrf.mxu1 }
 0x1ec   : > { %v1045_v15 = vpop.f32.mrf.mxu2 }
 0x1ee   : > { %v937_v42 = vpop.f32.mrf.mxu0 }
 0x1ef   : > { %v938_v51 = vadd.f32 %v937_v42, %v884_v35  ;;  %v1082_v52 = vpop.f32.mrf.mxu3 }
 0x1f1   : > { %v977_v61 = vadd.f32 %v976_v60, %v938_v51 }
 0x1f3   : > { %v1046_v44 = vadd.f32 %v1045_v15, %v977_v61 }
 0x1f5   : > { %v4910_v41 = vadd.f32 %v1082_v52, %v1046_v44 }
 0x1f7   : > { %1772 = vrot.lane.b32.xlu2 %v4910_v41, %s3971_s26  ;;  %v1447_v25 = vsel %vm1442_vm4, %v4910_v41, 0 }
 0x1f8   : > { %v1464_v54 = vand.u32 4294901760, %v1447_v25 }
 0x1fa   : > { %1465 = vmatpush.xpose.msra.mxu2 %v1464_v54  ;;  %v1491_v45 = vsub.f32 %v1447_v25, %v1464_v54 }
 0x1fc   : > { %v1492_v16 = vand.u32 4294901760, %v1491_v45 }
 0x1fd   : > { %1471 = vmatmul.f32.vlgmr.msra.gmra.mxu2 %v1470_v32 }
 0x1fe   : > { %1518 = vmatpush.xpose.msrb.mxu2 %v1491_v45  ;;  %v1493_v43 = vsub.f32 %v1491_v45, %v1492_v16 }
 0x1ff   : > { %1770 = vrot.lane.b32.xlu2 %v4906_v48, %s3971_s26 }
 0x200   : > { %v1494_v13 = vand.u32 4294901760, %v1493_v43 }
 0x202   : > { %1567 = vmatpush.xpose.msra.mxu2 %v1492_v16  ;;  %1495 = vmatpush.xpose.msra.mxu3 %v1494_v13 }
 0x205   : > { %1497 = vmatmul.f32.vlgmr.msra.gmra.mxu3 %v1466_v9  ;;  %1521 = vmatmul.f32.vlgmr.msrb.gmra.mxu2 %v1467_v47 }
 0x206   : > { %1541 = vmatpush.xpose.msrb.mxu3 %v1464_v54  ;;  %v1224_v4 = vpop.f32.mrf.mxu1 }
 0x20a   : > { %1589 = vmatpush.xpose.msra.mxu3 %v1464_v54 }
 0x20d   : > { %1545 = vmatmul.f32.vlgmr.msrb.gmra.mxu3 %v1468_v20  ;;  %1569 = vmatmul.f32.vlgmr.msra.gmra.mxu2 %v1466_v9 }
 0x20e   : > { %v1278_v24 = vpop.f32.mrf.mxu2 }
 0x20f   : > { %v1123_v58 = vpop.f32.mrf.mxu0 }
 0x210   : > { %v1225_v6 = vadd.f32 %v1224_v4, %v1123_v58 }
 0x211   : > { %v1317_v56 = vpop.f32.mrf.mxu3 }
 0x212   : > { %v1279_v50 = vadd.f32 %v1278_v24, %v1225_v6 }
 0x214   : > { %v1318_v59 = vadd.f32 %v1317_v56, %v1279_v50 }
 0x215   : > { %1591 = vmatmul.f32.vlgmr.msra.gmra.mxu3 %v1466_v9 }
 0x226   : > { %v1423_v46 = vpop.f32.mrf.mxu1 }
 0x22f   : > { %v1386_v14 = vpop.f32.mrf.mxu0 }
 0x230   : > { %v1387_v28 = vadd.f32 %v1386_v14, %v1318_v59 }
 0x232   : > { %v4918_v21 = vadd.f32 %v1423_v46, %v1387_v28 }
 0x234   : > { %1950 = vrot.lane.b32.xlu2 %v4918_v21, %s3971_s26  ;;  %v1639_v1 = vand.u32 4294901760, %v4918_v21  ;;  %s3901_s26 = sshra.s32 %s3541_s8, 4  ;;  %s3902_s26 = int_to_ptr.hbm [resolvable:$true] %s3901_s26 }
 0x235   : > { %p3908_p9 = scmp.lt.s32.totalorder %s3902_s26, %s5103_s6 }
 0x236   : > { %1640 = vmatpush.msrb.mxu2 %v1639_v1  ;;  %1716 = vmatpush.msrb.mxu1 %v1639_v1  ;;  %v1666_v0 = vsub.f32 %v4918_v21, %v1639_v1 }
 0x238   : > { %1693 = vmatpush.msrb.mxu0 %v1666_v0  ;;  %v1667_v3 = vand.u32 4294901760, %v1666_v0 }
 0x23a   : > { %1742 = vmatpush.msra.mxu2 %v1667_v3  ;;  %v1668_v7 = vsub.f32 %v1666_v0, %v1667_v3 }
 0x23c   : > { %v1669_v5 = vand.u32 4294901760, %v1668_v7 }
 0x23e   : > { %1670 = vmatpush.msrb.mxu3 %v1669_v5 }
 0x240   : > { %1764 = vmatpush.msra.mxu3 %v1639_v1 }
 0x251   : > { %v1773_v8 = vpop.permute.xlu2 %1772 }
 0x252   : > { %v1776_v26 = vsel %vm1442_vm4, %v1773_v8, 0 }
 0x253   : > { %v4925_v27 = vand.u32 4294901760, %v1776_v26 }
 0x255   : > { %v4928_v34 = vsub.f32 %v1776_v26, %v4925_v27  ;;  %1794 = vmatpush.xpose.msra.mxu0 %v4925_v27 }
 0x257   : > { %v1821_v11 = vand.u32 4294901760, %v4928_v34 }
 0x259   : > { %v1822_v17 = vsub.f32 %v4928_v34, %v1821_v11  ;;  %v1771_v62 = vpop.permute.xlu2 %1770 }
 0x25a   : > { %v1774_v60 = vsel %vm1442_vm4, %v1771_v62, 0 }
 0x25b   : > { %v1823_v19 = vand.u32 4294901760, %v1822_v17  ;;  %v1795_v52 = vand.u32 4294901760, %v1774_v60 }
 0x25d   : > { %1824 = vmatpush.xpose.msra.mxu1 %v1823_v19  ;;  %v1796_v16 = vsub.f32 %v1774_v60, %v1795_v52 }
 0x25f   : > { %v1797_v4 = vand.u32 4294901760, %v1796_v16 }
 0x261   : > { %v1798_v56 = vsub.f32 %v1796_v16, %v1797_v4 }
 0x263   : > { %v1799_v46 = vand.u32 4294901760, %v1798_v56 }
 0x280   : > { %v1472_v2 = vpop.f32.mrf.mxu2 }
 0x288   : > { %v1498_v10 = vpop.f32.mrf.mxu3  ;;  %v1522_v33 = vpop.f32.mrf.mxu2 }
 0x289   : > { %v1499_v38 = vadd.f32 %v1498_v10, %v1472_v2 }
 0x28b   : > { %v1523_v40 = vadd.f32 %v1522_v33, %v1499_v38 }
 0x28e   : > { %v1951_v47 = vpop.permute.xlu2 %1950 }
 0x28f   : > { %v1971_v44 = vand.u32 4294901760, %v1951_v47 }
 0x290   : > { %v1546_v39 = vpop.f32.mrf.mxu3  ;;  %v1570_v55 = vpop.f32.mrf.mxu2 }
 0x291   : > { %v1547_v36 = vadd.f32 %v1546_v39, %v1523_v40  ;;  %v1998_v45 = vsub.f32 %v1951_v47, %v1971_v44 }
 0x293   : > { %v1571_v63 = vadd.f32 %v1570_v55, %v1547_v36  ;;  %v1999_v58 = vand.u32 4294901760, %v1998_v45 }
 0x295   : > { %v2000_v50 = vsub.f32 %v1998_v45, %v1999_v58 }
 0x297   : > { %v2001_v28 = vand.u32 4294901760, %v2000_v50 }
 0x298   : > { %v1592_v37 = vpop.f32.mrf.mxu3 }
 0x299   : > { %v1593_v12 = vadd.f32 %v1592_v37, %v1571_v63 }
 0x29b   : > { %v1595_v18 = vmul.f32 0.17677669, %v1593_v12 }
 0x29d   : > { %v1597_v22 = vsel %vm1596_vm5, %v1595_v18, -inf }
 0x29e   : > { %1598 = vmax.xlane.f32.xlu1 %v1597_v22 }
 0x311   : > { %v1599_v23 = vpop.xlane.xlu1 %1598 }
 0x312   : > { %v1600_v29 = vsub.f32 %v1595_v18, %v1599_v23 }
 0x314   : > { %v1601_v30 = vmul.f32 1.442695, %v1600_v29 }
 0x316   : > { %3750 = vpow2.f32 %v1601_v30 }
 0x31c   : > { %v3751_v31 = vpop.eup %3750 }
 0x31d   : > { %v1603_v49 = vsel %vm1596_vm5, %v3751_v31, 0.0 }
 0x31e   : > { %1604 = vadd.xlane.f32.xlu1 %v1603_v49 }
 0x391   : > { %v1605_v57 = vpop.xlane.xlu1 %1604 }
 0x392   : > { %3752 = vrcp.f32 %v1605_v57  ;;  %v1617_v51 = vand.u32 2147483648, %v1605_v57  ;;  %v1615_v15 = vand.u32 2147483647, %v1605_v57  ;;  %vm1611_vm7 = vweird.f32 %v1605_v57 }
 0x394   : > { %v1618_v25 = vor.u32 1.1754944e-38, %v1617_v51  ;;  %vm1616_vm9 = vcmp.eq.f32.partialorder %v1615_v15, 8.507059e+37 }
 0x398   : > { %v3753_v9 = vpop.eup %3752 }
 0x399   : > { %v1607_v35 = vmul.f32 %v3753_v9, %v1605_v57  ;;  %vm1612_vm6 = vweird.f32 %v3753_v9 }
 0x39a   : > { %vm1613_vm8 = vmor %vm1611_vm7, %vm1612_vm6 }
 0x39b   : > { %v1608_v42 = vsub.f32 1.0, %v1607_v35 }
 0x39d   : > { %v1609_v61 = vmul.f32 %v3753_v9, %v1608_v42 }
 0x39f   : > { %v1610_v20 = vadd.f32 %v3753_v9, %v1609_v61 }
 0x3a1   : > { %v1614_v53 = vsel %vm1613_vm8, %v3753_v9, %v1610_v20 }
 0x3a2   : > { %v1619_v54 = vsel %vm1616_vm9, %v1618_v25, %v1614_v53 }
 0x3a3   : > { %v1620_v32 = vmul.f32 %v3751_v31, %v1619_v54  ;;  %v1433_v54 = vld [vmem:[#allocation8 + $0x38] sm:$0xff] }
 0x3a5   : > { %v1622_v43 = vsel %vm1596_vm5, %v1620_v32, 0  ;;  %v1432_v32 = vld [vmem:[#allocation8 + $0x30] sm:$0xff] }
 0x3a6   : > { %v1641_v13 = vand.u32 4294901760, %v1622_v43 }
 0x3a8   : > { %1672 = vmatmul.f32.vlgmr.msrb.gmra.mxu3 %v1641_v13  ;;  %v1642_v6 = vsub.f32 %v1622_v43, %v1641_v13  ;;  %v2119_v43 = vand.u32 4294901760, %v1432_v32 }
 0x3a9   : > { %1870 = vmatpush.xpose.msrb.mxu3 %v4925_v27 }
 0x3aa   : > { %1696 = vmatmul.f32.vlgmr.msrb.gmra.mxu0 %v1642_v6  ;;  %v1643_v24 = vand.u32 4294901760, %v1642_v6 }
 0x3ab   : > { %1896 = vmatpush.xpose.msrb.mxu0 %v1821_v11 }
 0x3ac   : > { %1720 = vmatmul.f32.vlgmr.msrb.gmra.mxu1 %v1643_v24  ;;  %v1644_v59 = vsub.f32 %v1642_v6, %v1643_v24  ;;  %v1430_v24 = vld [vmem:[#allocation8 + $0x20] sm:$0xff] }
 0x3ad   : > { %1918 = vmatpush.xpose.msrb.mxu1 %v4925_v27 }
 0x3ae   : > { %v1645_v14 = vand.u32 4294901760, %v1644_v59 }
 0x3b0   : > { %1646 = vmatmul.f32.vlgmr.msrb.gmra.mxu2 %v1645_v14  ;;  %1766 = vmatmul.f32.vlgmr.msra.gmra.mxu3 %v1641_v13  ;;  %v2123_v14 = vand.u32 4294901760, %v1430_v24 }
 0x3b1   : > { %1847 = vmatpush.xpose.msrb.mxu2 %v4928_v34  ;;  %2002 = vmatpush.msra.mxu3 %v2001_v28 }
 0x3b2   : > { %1800 = vmatmul.f32.vlgmr.msra.gmra.mxu0 %v1799_v46 }
 0x3b3   : > { %2025 = vmatpush.msra.mxu0 %v1998_v45  ;;  %v2117_v45 = vand.u32 4294901760, %v1433_v54 }
 0x3b4   : > { %1826 = vmatmul.f32.vlgmr.msra.gmra.mxu1 %v1795_v52 }
 0x3b5   : > { %2048 = vmatpush.msra.mxu1 %v1971_v44 }
 0x3b8   : > { %1744 = vmatmul.f32.vlgmr.msra.gmra.mxu2 %v1641_v13  ;;  %1874 = vmatmul.f32.vlgmr.msrb.gmra.mxu3 %v1797_v4  ;;  %v1431_v13 = vld [vmem:[#allocation8 + $0x28] sm:$0xff]  ;;  %v2153_v4 = vsub.f32 %v1432_v32, %v2119_v43 }
 0x3b9   : > { %1972 = vmatpush.msra.mxu2 %v1971_v44  ;;  %2096 = vmatpush.msrb.mxu3 %v1971_v44  ;;  %v2121_v6 = vand.u32 4294901760, %v1431_v13 }
 0x3ba   : > { %1898 = vmatmul.f32.vlgmr.msrb.gmra.mxu0 %v1795_v52  ;;  %v2154_v56 = vand.u32 4294901760, %v2153_v4 }
 0x3bb   : > { %2118 = vmatpush.msrb.mxu0 %v2117_v45  ;;  %v2159_v59 = vsub.f32 %v1431_v13, %v2121_v6 }
 0x3bc   : > { %1920 = vmatmul.f32.vlgmr.msrb.gmra.mxu1 %v1795_v52  ;;  %v2155_v46 = vsub.f32 %v2153_v4, %v2154_v56 }
 0x3bd   : > { %2120 = vmatpush.msrb.mxu0 %v2119_v43 }
 0x3bf   : > { %2122 = vmatpush.msrb.mxu0 %v2121_v6 }
 0x3c0   : > { %1850 = vmatmul.f32.vlgmr.msrb.gmra.mxu2 %v1796_v16  ;;  %v2147_v16 = vsub.f32 %v1433_v54, %v2117_v45 }
 0x3c1   : > { %2074 = vmatpush.msrb.mxu2 %v1999_v58  ;;  %2124 = vmatpush.msrb.mxu0 %v2123_v14 }
 0x3c2   : > { %v2148_v58 = vand.u32 4294901760, %v2147_v16 }
 0x3c4   : > { %v2149_v50 = vsub.f32 %v2147_v16, %v2148_v58 }
 0x3c6   : > { %v2150_v28 = vand.u32 4294901760, %v2149_v50 }
 0x3c8   : > { %2151 = vmatpush.msrb.mxu1 %v2150_v28 }
 0x427   : > { %v1697_v0 = vpop.f32.mrf.mxu0 }
 0x429   : > { %v1721_v5 = vpop.f32.mrf.mxu1 }
 0x42b   : > { %v1673_v1 = vpop.f32.mrf.mxu3 }
 0x42f   : > { %v1801_v17 = vpop.f32.mrf.mxu0 }
 0x431   : > { %v1827_v2 = vpop.f32.mrf.mxu1 }
 0x432   : > { %v1828_v10 = vadd.f32 %v1827_v2, %v1801_v17 }
 0x433   : > { %v1647_v3 = vpop.f32.mrf.mxu2  ;;  %v1767_v27 = vpop.f32.mrf.mxu3 }
 0x434   : > { %v1674_v7 = vadd.f32 %v1673_v1, %v1647_v3  ;;  %v2160_v1 = vand.u32 4294901760, %v2159_v59  ;;  %v2156_v3 = vand.u32 4294901760, %v2155_v46 }
 0x436   : > { %v1698_v8 = vadd.f32 %v1697_v0, %v1674_v7  ;;  %v2165_v0 = vsub.f32 %v1430_v24, %v2123_v14  ;;  %v2161_v7 = vsub.f32 %v2159_v59, %v2160_v1  ;;  %2157 = vmatpush.msrb.mxu1 %v2156_v3 }
 0x437   : > { %v1899_v36 = vpop.f32.mrf.mxu0 }
 0x438   : > { %v1722_v26 = vadd.f32 %v1721_v5, %v1698_v8  ;;  %v2166_v5 = vand.u32 4294901760, %v2165_v0  ;;  %v1429_v8 = vld [vmem:[#allocation8 + $0x18] sm:$0xff] }
 0x439   : > { %v1921_v63 = vpop.f32.mrf.mxu1 }
 0x43b   : > { %v1745_v34 = vpop.f32.mrf.mxu2  ;;  %v1875_v39 = vpop.f32.mrf.mxu3 }
 0x43c   : > { %v1746_v11 = vadd.f32 %v1745_v34, %v1722_v26  ;;  %v4952_v26 = vand.u32 4294901760, %v1429_v8  ;;  %v2167_v34 = vsub.f32 %v2165_v0, %v2166_v5 }
 0x43e   : > { %v4940_v19 = vadd.f32 %v1767_v27, %v1746_v11  ;;  %v2162_v27 = vand.u32 4294901760, %v2161_v7  ;;  %v1428_v11 = vld [vmem:[#allocation8 + $0x10] sm:$0xff]  ;;  %v4956_v17 = vsub.f32 %v1429_v8, %v4952_v26 }
 0x43f   : > { %v4958_v2 = vand.u32 4294901760, %v1428_v11 }
 0x440   : > { %2163 = vmatpush.msrb.mxu1 %v2162_v27 }
 0x443   : > { %v1851_v33 = vpop.f32.mrf.mxu2 }
 0x444   : > { %v1852_v38 = vadd.f32 %v1851_v33, %v1828_v10  ;;  %v2168_v10 = vand.u32 4294901760, %v2167_v34  ;;  %v1427_v33 = vld [vmem:[#allocation8 + $0x8] sm:$0xff] }
 0x446   : > { %v1876_v40 = vadd.f32 %v1875_v39, %v1852_v38  ;;  %v2336_v38 = vand.u32 4294901760, %v4956_v17  ;;  %v4962_v39 = vand.u32 4294901760, %v1427_v33  ;;  %2169 = vmatpush.msrb.mxu1 %v2168_v10 }
 0x448   : > { %v1900_v55 = vadd.f32 %v1899_v36, %v1876_v40  ;;  %v4965_v40 = vsub.f32 %v1428_v11, %v4958_v2  ;;  %v1426_v36 = vld [vmem:[#allocation8] sm:$0xff] }
 0x44a   : > { %v1922_v37 = vadd.f32 %v1921_v63, %v1900_v55  ;;  %v2337_v55 = vsub.f32 %v4956_v17, %v2336_v38  ;;  %v2342_v63 = vand.u32 4294901760, %v4965_v40 }
 0x44c   : > { %v1924_v12 = vmul.f32 0.17677669, %v1922_v37  ;;  %v4970_v37 = vand.u32 4294901760, %v1426_v36 }
 0x44e   : > { %v1925_v18 = vsel %vm1596_vm5, %v1924_v12, -inf }
 0x44f   : > { %1926 = vmax.xlane.f32.xlu0 %v1925_v18  ;;  %v2338_v18 = vand.u32 4294901760, %v2337_v55 }
 0x463   : > { %2480 = vrot.lane.b32.xlu0 %v4910_v41, %s3972_s30 }
 0x4c2   : > { %v1927_v22 = vpop.xlane.xlu0 %1926 }
 0x4c3   : > { %v1928_v23 = vsub.f32 %v1924_v12, %v1927_v22  ;;  %v4973_v12 = vsub.f32 %v1427_v33, %v4962_v39  ;;  %v2343_v22 = vsub.f32 %v4965_v40, %v2342_v63 }
 0x4c5   : > { %v1929_v29 = vmul.f32 1.442695, %v1928_v23  ;;  %v2348_v23 = vand.u32 4294901760, %v4973_v12 }
 0x4c7   : > { %3754 = vpow2.f32 %v1929_v29  ;;  %v4979_v29 = vsub.f32 %v1426_v36, %v4970_v37 }
 0x4cd   : > { %v3755_v30 = vpop.eup %3754 }
 0x4ce   : > { %v1931_v31 = vsel %vm1596_vm5, %v3755_v30, 0.0 }
 0x4cf   : > { %1932 = vadd.xlane.f32.xlu1 %v1931_v31  ;;  %v2349_v31 = vsub.f32 %v4973_v12, %v2348_v23 }
 0x4e8   : > { %2478 = vrot.lane.b32.xlu1 %v4906_v48, %s3972_s30 }
 0x4f0   : > { %2657 = vrot.lane.b32.xlu1 %v4918_v21, %s3972_s30  ;;  %s3903_s30 = scalar_lea.hbm %s3902_s26, 8 }
 0x4f1   : > { %p3904_p1 = scmp.ne.s32.totalorder %s3902_s26, %s3903_s30  ;;  %p3909_p10 = scmp.lt.s32.totalorder %s3907_s29, %s3903_s30 }
 0x4f3   : > { %p3905_p4 = pnand %p3904_p1, %p4091_p3  ;;  %p3910_p2 = por %p3909_p10, %p3908_p9 }
 0x4f5   : > { %p3906_p8 = pneg %p3905_p4 }
 0x4f7   : > { %p3911_p11 = pnand %p3910_p2, %p3906_p8 }
 0x4f8   : > { %3000 = vrot.lane.b32.xlu1 %v4910_v41, %s3973_s7 }
 0x500   : > { %2998 = vrot.lane.b32.xlu1 %v4906_v48, %s3973_s7 }
 0x542   : > { %v1933_v49 = vpop.xlane.xlu1 %1932 }
 0x543   : > { %3756 = vrcp.f32 %v1933_v49  ;;  %v1945_v35 = vand.u32 2147483648, %v1933_v49  ;;  %v1943_v47 = vand.u32 2147483647, %v1933_v49  ;;  %vm1939_vm11 = vweird.f32 %v1933_v49 }
 0x545   : > { %v1946_v60 = vor.u32 1.1754944e-38, %v1945_v35  ;;  %vm1944_vm13 = vcmp.eq.f32.partialorder %v1943_v47, 8.507059e+37 }
 0x549   : > { %v3757_v57 = vpop.eup %3756 }
 0x54a   : > { %v1935_v62 = vmul.f32 %v3757_v57, %v1933_v49  ;;  %vm1940_vm10 = vweird.f32 %v3757_v57  ;;  %v2354_v49 = vand.u32 4294901760, %v4979_v29 }
 0x54b   : > { %vm1941_vm12 = vmor %vm1939_vm11, %vm1940_vm10 }
 0x54c   : > { %v1936_v9 = vsub.f32 1.0, %v1935_v62  ;;  %v2355_v62 = vsub.f32 %v4979_v29, %v2354_v49 }
 0x54e   : > { %v1937_v42 = vmul.f32 %v3757_v57, %v1936_v9  ;;  %v2356_v9 = vand.u32 4294901760, %v2355_v62 }
 0x550   : > { %v1938_v51 = vadd.f32 %v3757_v57, %v1937_v42 }
 0x552   : > { %v1942_v61 = vsel %vm1941_vm12, %v3757_v57, %v1938_v51  ;;  %v2350_v57 = vand.u32 4294901760, %v2349_v31  ;;  %v2481_v51 = vpop.permute.xlu0 %2480 }
 0x553   : > { %v1947_v15 = vsel %vm1944_vm13, %v1946_v60, %v1942_v61 }
 0x554   : > { %v1948_v41 = vmul.f32 %v3755_v30, %v1947_v15  ;;  %v2344_v30 = vand.u32 4294901760, %v2343_v22  ;;  %v2484_v15 = vsel %vm1442_vm4, %v2481_v51, 0 }
 0x556   : > { %v1954_v44 = vsel %vm1596_vm5, %v1948_v41, 0  ;;  %v2291_v41 = vsel %vm1442_vm4, %v4940_v19, 0 }
 0x557   : > { %v1973_v48 = vand.u32 4294901760, %v1954_v44 }
 0x559   : > { %2004 = vmatmul.f32.vlgmr.msra.gmra.mxu3 %v1973_v48  ;;  %v1974_v20 = vsub.f32 %v1954_v44, %v1973_v48 }
 0x55a   : > { %2218 = vmatpush.msra.mxu3 %v2117_v45 }
 0x55b   : > { %2028 = vmatmul.f32.vlgmr.msra.gmra.mxu0 %v1974_v20  ;;  %v1975_v52 = vand.u32 4294901760, %v1974_v20 }
 0x55c   : > { %2220 = vmatpush.msra.mxu3 %v2119_v43  ;;  %2247 = vmatpush.msra.mxu0 %v2148_v58 }
 0x55d   : > { %2052 = vmatmul.f32.vlgmr.msra.gmra.mxu1 %v1975_v52  ;;  %v1976_v25 = vsub.f32 %v1974_v20, %v1975_v52  ;;  %v2501_v20 = vand.u32 4294901760, %v2484_v15  ;;  %v2479_v52 = vpop.permute.xlu1 %2478 }
 0x55e   : > { %2222 = vmatpush.msra.mxu3 %v2121_v6  ;;  %2251 = vmatpush.msra.mxu0 %v2154_v56  ;;  %v2482_v7 = vsel %vm1442_vm4, %v2479_v52, 0 }
 0x55f   : > { %v1977_v53 = vand.u32 4294901760, %v1976_v25  ;;  %2278 = vmatpush.msra.mxu1 %v2117_v45  ;;  %v2503_v8 = vand.u32 4294901760, %v2482_v7 }
 0x560   : > { %2224 = vmatpush.msra.mxu3 %v2123_v14  ;;  %2255 = vmatpush.msra.mxu0 %v2160_v1 }
 0x561   : > { %1978 = vmatmul.f32.vlgmr.msra.gmra.mxu2 %v1977_v53  ;;  %2098 = vmatmul.f32.vlgmr.msrb.gmra.mxu3 %v1973_v48  ;;  %v2313_v53 = vand.u32 4294901760, %v2291_v41  ;;  %v2504_v27 = vsub.f32 %v2482_v7, %v2503_v8 }
 0x562   : > { %2189 = vmatpush.msra.mxu2 %v2147_v16  ;;  %2259 = vmatpush.msra.mxu0 %v2166_v5  ;;  %v2528_v16 = vsub.f32 %v2484_v15, %v2501_v20 }
 0x563   : > { %2280 = vmatpush.msra.mxu1 %v2119_v43  ;;  %2339 = vmatpush.msrb.mxu3 %v2338_v18  ;;  %v2314_v43 = vsub.f32 %v2291_v41, %v2313_v53  ;;  %v2505_v11 = vand.u32 4294901760, %v2504_v27 }
 0x564   : > { %2192 = vmatpush.msra.mxu2 %v2153_v4  ;;  %v2529_v4 = vand.u32 4294901760, %v2528_v16 }
 0x565   : > { %2282 = vmatpush.msra.mxu1 %v2121_v6  ;;  %2345 = vmatpush.msrb.mxu3 %v2344_v30  ;;  %v2315_v19 = vand.u32 4294901760, %v2314_v43  ;;  %v2658_v24 = vpop.permute.xlu1 %2657 }
 0x566   : > { %2195 = vmatpush.msra.mxu2 %v2159_v59  ;;  %v2530_v56 = vsub.f32 %v2528_v16, %v2529_v4 }
 0x567   : > { %2284 = vmatpush.msra.mxu1 %v2123_v14  ;;  %2351 = vmatpush.msrb.mxu3 %v2350_v57  ;;  %v2678_v14 = vand.u32 4294901760, %v2658_v24  ;;  %v2316_v28 = vsub.f32 %v2314_v43, %v2315_v19 }
 0x568   : > { %2198 = vmatpush.msra.mxu2 %v2165_v0  ;;  %v2531_v1 = vand.u32 4294901760, %v2530_v56 }
 0x569   : > { %2076 = vmatmul.f32.vlgmr.msrb.gmra.mxu2 %v1973_v48  ;;  %2357 = vmatpush.msrb.mxu3 %v2356_v9  ;;  %v2705_v0 = vsub.f32 %v2658_v24, %v2678_v14  ;;  %v2317_v3 = vand.u32 4294901760, %v2316_v28 }
 0x56a   : > { %2306 = vmatpush.msrb.mxu2 %v4952_v26 }
 0x56b   : > { %v2706_v5 = vand.u32 4294901760, %v2705_v0 }
 0x56c   : > { %2308 = vmatpush.msrb.mxu2 %v4958_v2 }
 0x56e   : > { %2310 = vmatpush.msrb.mxu2 %v4962_v39 }
 0x570   : > { %2312 = vmatpush.msrb.mxu2 %v4970_v37 }
 0x5d8   : > { %v2029_v60 = vpop.f32.mrf.mxu0 }
 0x5da   : > { %v2053_v44 = vpop.f32.mrf.mxu1 }
 0x5dc   : > { %v2005_v35 = vpop.f32.mrf.mxu3 }
 0x5e4   : > { %v1979_v42 = vpop.f32.mrf.mxu2  ;;  %v2099_v45 = vpop.f32.mrf.mxu3 }
 0x5e5   : > { %v2006_v47 = vadd.f32 %v2005_v35, %v1979_v42 }
 0x5e7   : > { %v2030_v61 = vadd.f32 %v2029_v60, %v2006_v47 }
 0x5e9   : > { %v2054_v48 = vadd.f32 %v2053_v44, %v2030_v61 }
 0x5ec   : > { %v2077_v25 = vpop.f32.mrf.mxu2 }
 0x5ed   : > { %v2078_v54 = vadd.f32 %v2077_v25, %v2054_v48 }
 0x5ef   : > { %v2100_v32 = vadd.f32 %v2099_v45, %v2078_v54 }
 0x5f1   : > { %v2103_v13 = vsel %vm1442_vm4, %v2100_v32, 0 }
 0x5f2   : > { %v2125_v58 = vand.u32 4294901760, %v2103_v13 }
 0x5f4   : > { %v2126_v6 = vsub.f32 %v2103_v13, %v2125_v58  ;;  %2171 = vmatmul.f32.vlgmr.msrb.gmra.mxu1 %v2125_v58 }
 0x5f5   : > { %2406 = vmatpush.msrb.mxu1 %v4952_v26 }
 0x5f6   : > { %2201 = vmatmul.f32.vlgmr.msra.gmra.mxu2 %v2126_v6  ;;  %v2127_v50 = vand.u32 4294901760, %v2126_v6 }
 0x5f7   : > { %2408 = vmatpush.msrb.mxu1 %v4958_v2  ;;  %2435 = vmatpush.msra.mxu2 %v2336_v38 }
 0x5f8   : > { %2228 = vmatmul.f32.vlgmr.msra.gmra.mxu3 %v2127_v50  ;;  %v2128_v59 = vsub.f32 %v2126_v6, %v2127_v50  ;;  %v1435_v50 = vld [vmem:[#allocation8 + $0x48] sm:$0xff] }
 0x5f9   : > { %2410 = vmatpush.msrb.mxu1 %v4962_v39  ;;  %2439 = vmatpush.msra.mxu2 %v2342_v63  ;;  %v5010_v56 = vand.u32 4294901760, %v1435_v50 }
 0x5fa   : > { %2466 = vmatpush.msra.mxu3 %v4952_v26  ;;  %v2129_v46 = vand.u32 4294901760, %v2128_v59  ;;  %v2707_v26 = vsub.f32 %v2705_v0, %v2706_v5  ;;  %v1434_v59 = vld [vmem:[#allocation8 + $0x40] sm:$0xff] }
 0x5fb   : > { %2412 = vmatpush.msrb.mxu1 %v4970_v37  ;;  %2443 = vmatpush.msra.mxu2 %v2348_v23 }
 0x5fc   : > { %2468 = vmatpush.msra.mxu3 %v4958_v2  ;;  %2130 = vmatmul.f32.vlgmr.msrb.gmra.mxu0 %v2129_v46  ;;  %v2708_v34 = vand.u32 4294901760, %v2707_v26 }
 0x5fd   : > { %2286 = vmatmul.f32.vlgmr.msra.gmra.mxu1 %v2125_v58  ;;  %2377 = vmatpush.msrb.mxu0 %v4956_v17  ;;  %v2506_v17 = vsub.f32 %v2504_v27, %v2505_v11 }
 0x5fe   : > { %2532 = vmatpush.xpose.msra.mxu1 %v2531_v1  ;;  %2447 = vmatpush.msra.mxu2 %v2354_v49  ;;  %v3001_v1 = vpop.permute.xlu1 %3000 }
 0x5ff   : > { %2470 = vmatpush.msra.mxu3 %v4962_v39  ;;  %2318 = vmatmul.f32.vlgmr.msrb.gmra.mxu2 %v2317_v3  ;;  %v2507_v2 = vand.u32 4294901760, %v2506_v17  ;;  %v3004_v7 = vsel %vm1442_vm4, %v3001_v1, 0 }
 0x600   : > { %2555 = vmatpush.xpose.msrb.mxu2 %v2528_v16  ;;  %2380 = vmatpush.msrb.mxu0 %v4965_v40 }
 0x601   : > { %2472 = vmatpush.msra.mxu3 %v4970_v37 }
 0x602   : > { %2359 = vmatmul.f32.vlgmr.msrb.gmra.mxu3 %v2313_v53  ;;  %2383 = vmatpush.msrb.mxu0 %v4973_v12 }
 0x603   : > { %2578 = vmatpush.xpose.msrb.mxu3 %v2501_v20 }
 0x604   : > { %2386 = vmatpush.msrb.mxu0 %v4979_v29 }
 0x605   : > { %2261 = vmatmul.f32.vlgmr.msra.gmra.mxu0 %v2125_v58  ;;  %2416 = vmatmul.f32.vlgmr.msrb.gmra.mxu1 %v2315_v19  ;;  %v1436_v19 = vld [vmem:[#allocation8 + $0x50] sm:$0xff] }
 0x606   : > { %2502 = vmatpush.xpose.msra.mxu0 %v2501_v20  ;;  %2626 = vmatpush.xpose.msrb.mxu1 %v2501_v20  ;;  %v5007_v24 = vand.u32 4294901760, %v1436_v19 }
 0x607   : > { %2449 = vmatmul.f32.vlgmr.msra.gmra.mxu2 %v2313_v53 }
 0x608   : > { %2679 = vmatpush.msra.mxu2 %v2678_v14 }
 0x60a   : > { %2474 = vmatmul.f32.vlgmr.msra.gmra.mxu3 %v2313_v53 }
 0x60b   : > { %2709 = vmatpush.msra.mxu3 %v2708_v34 }
 0x60d   : > { %2389 = vmatmul.f32.vlgmr.msrb.gmra.mxu0 %v2314_v43  ;;  %2534 = vmatmul.f32.vlgmr.msra.gmra.mxu1 %v2503_v8 }
 0x60e   : > { %2604 = vmatpush.xpose.msrb.mxu0 %v2529_v4  ;;  %2755 = vmatpush.msra.mxu1 %v2678_v14  ;;  %v1437_v4 = vld [vmem:[#allocation8 + $0x58] sm:$0xff] }
 0x60f   : > { %2558 = vmatmul.f32.vlgmr.msrb.gmra.mxu2 %v2504_v27  ;;  %v5005_v6 = vand.u32 4294901760, %v1437_v4  ;;  %v5018_v27 = vand.u32 4294901760, %v3004_v7 }
 0x610   : > { %2781 = vmatpush.msrb.mxu2 %v2706_v5 }
 0x612   : > { %2582 = vmatmul.f32.vlgmr.msrb.gmra.mxu3 %v2505_v11 }
 0x613   : > { %2803 = vmatpush.msrb.mxu3 %v2678_v14  ;;  %v5013_v14 = vand.u32 4294901760, %v1434_v59 }
 0x615   : > { %2508 = vmatmul.f32.vlgmr.msra.gmra.mxu0 %v2507_v2  ;;  %2628 = vmatmul.f32.vlgmr.msrb.gmra.mxu1 %v2503_v8 }
 0x616   : > { %2732 = vmatpush.msra.mxu0 %v2705_v0 }
 0x61d   : > { %2606 = vmatmul.f32.vlgmr.msrb.gmra.mxu0 %v2503_v8 }
 0x61e   : > { %2825 = vmatpush.msrb.mxu0 %v5005_v6 }
 0x620   : > { %2827 = vmatpush.msrb.mxu0 %v5007_v24 }
 0x622   : > { %2829 = vmatpush.msrb.mxu0 %v5010_v56 }
 0x624   : > { %2831 = vmatpush.msrb.mxu0 %v5013_v14 }
 0x671   : > { %v2172_v10 = vpop.f32.mrf.mxu1 }
 0x679   : > { %v2131_v33 = vpop.f32.mrf.mxu0  ;;  %v2202_v38 = vpop.f32.mrf.mxu2 }
 0x67a   : > { %v2173_v39 = vadd.f32 %v2172_v10, %v2131_v33  ;;  %v2287_v55 = vpop.f32.mrf.mxu1  ;;  %v5021_v10 = vsub.f32 %v3004_v7, %v5018_v27 }
 0x67b   : > { %v2229_v40 = vpop.f32.mrf.mxu3 }
 0x67c   : > { %v2203_v36 = vadd.f32 %v2202_v38, %v2173_v39 }
 0x67e   : > { %v2230_v63 = vadd.f32 %v2229_v40, %v2203_v36  ;;  %v3049_v40 = vand.u32 4294901760, %v5021_v10 }
 0x682   : > { %v2262_v37 = vpop.f32.mrf.mxu0  ;;  %v2319_v12 = vpop.f32.mrf.mxu2 }
 0x683   : > { %v2263_v18 = vadd.f32 %v2262_v37, %v2230_v63  ;;  %v2417_v30 = vpop.f32.mrf.mxu1  ;;  %v3050_v63 = vsub.f32 %v5021_v10, %v3049_v40 }
 0x685   : > { %v2288_v22 = vadd.f32 %v2287_v55, %v2263_v18  ;;  %v2360_v23 = vpop.f32.mrf.mxu3 }
 0x687   : > { %v2320_v29 = vadd.f32 %v2319_v12, %v2288_v22  ;;  %v2854_v12 = vsub.f32 %v1437_v4, %v5005_v6  ;;  %v3051_v22 = vand.u32 4294901760, %v3050_v63 }
 0x689   : > { %v2361_v31 = vadd.f32 %v2360_v23, %v2320_v29  ;;  %v2860_v23 = vsub.f32 %v1436_v19, %v5007_v24  ;;  %v2866_v29 = vsub.f32 %v1435_v50, %v5010_v56 }
 0x68a   : > { %v2390_v49 = vpop.f32.mrf.mxu0  ;;  %v2450_v57 = vpop.f32.mrf.mxu2 }
 0x68b   : > { %v2391_v62 = vadd.f32 %v2390_v49, %v2361_v31  ;;  %v2535_v51 = vpop.f32.mrf.mxu1  ;;  %v2855_v31 = vand.u32 4294901760, %v2854_v12 }
 0x68d   : > { %v2418_v9 = vadd.f32 %v2417_v30, %v2391_v62  ;;  %v2475_v35 = vpop.f32.mrf.mxu3  ;;  %v2872_v30 = vsub.f32 %v1434_v59, %v5013_v14  ;;  %v2856_v49 = vsub.f32 %v2854_v12, %v2855_v31 }
 0x68f   : > { %v2451_v42 = vadd.f32 %v2450_v57, %v2418_v9  ;;  %v2861_v57 = vand.u32 4294901760, %v2860_v23  ;;  %v2857_v62 = vand.u32 4294901760, %v2856_v49 }
 0x691   : > { %v5001_v47 = vadd.f32 %v2475_v35, %v2451_v42  ;;  %v2862_v9 = vsub.f32 %v2860_v23, %v2861_v57  ;;  %v2867_v35 = vand.u32 4294901760, %v2866_v29  ;;  %2858 = vmatpush.msrb.mxu1 %v2857_v62 }
 0x692   : > { %v2509_v60 = vpop.f32.mrf.mxu0  ;;  %v2559_v15 = vpop.f32.mrf.mxu2 }
 0x693   : > { %v2536_v61 = vadd.f32 %v2535_v51, %v2509_v60  ;;  %v2629_v25 = vpop.f32.mrf.mxu1  ;;  %v2863_v42 = vand.u32 4294901760, %v2862_v9  ;;  %v2868_v51 = vsub.f32 %v2866_v29, %v2867_v35  ;;  %v2873_v60 = vand.u32 4294901760, %v2872_v30 }
 0x695   : > { %v2560_v41 = vadd.f32 %v2559_v15, %v2536_v61  ;;  %v2583_v44 = vpop.f32.mrf.mxu3  ;;  %2864 = vmatpush.msrb.mxu1 %v2863_v42  ;;  %v2869_v61 = vand.u32 4294901760, %v2868_v51  ;;  %v2874_v15 = vsub.f32 %v2872_v30, %v2873_v60 }
 0x697   : > { %v2584_v48 = vadd.f32 %v2583_v44, %v2560_v41  ;;  %2870 = vmatpush.msrb.mxu1 %v2869_v61  ;;  %v2875_v41 = vand.u32 4294901760, %v2874_v15 }
 0x699   : > { %2876 = vmatpush.msrb.mxu1 %v2875_v41 }
 0x69a   : > { %v2607_v20 = vpop.f32.mrf.mxu0 }
 0x69b   : > { %v2608_v52 = vadd.f32 %v2607_v20, %v2584_v48 }
 0x69d   : > { %v2630_v53 = vadd.f32 %v2629_v25, %v2608_v52  ;;  %v2999_v52 = vpop.permute.xlu1 %2998 }
 0x69f   : > { %v2632_v54 = vmul.f32 0.17677669, %v2630_v53 }
 0x6a1   : > { %v2633_v45 = vsel %vm1596_vm5, %v2632_v54, -inf }
 0x6a2   : > { %2634 = vmax.xlane.f32.xlu2 %v2633_v45 }
 0x715   : > { %v2635_v32 = vpop.xlane.xlu2 %2634 }
 0x716   : > { %v2636_v16 = vsub.f32 %v2632_v54, %v2635_v32  ;;  %v3002_v54 = vsel %vm1442_vm4, %v2999_v52, 0 }
 0x718   : > { %v2637_v43 = vmul.f32 1.442695, %v2636_v16  ;;  %v3023_v16 = vand.u32 4294901760, %v3002_v54 }
 0x71a   : > { %3758 = vpow2.f32 %v2637_v43 }
 0x720   : > { %v3759_v13 = vpop.eup %3758 }
 0x721   : > { %v2639_v58 = vsel %vm1596_vm5, %v3759_v13, 0.0 }
 0x722   : > { %2640 = vadd.xlane.f32.xlu0 %v2639_v58 }
 0x795   : > { %v2641_v28 = vpop.xlane.xlu0 %2640 }
 0x796   : > { %3760 = vrcp.f32 %v2641_v28  ;;  %v2653_v5 = vand.u32 2147483648, %v2641_v28  ;;  %v2651_v26 = vand.u32 2147483647, %v2641_v28  ;;  %vm2647_vm15 = vweird.f32 %v2641_v28 }
 0x798   : > { %v2654_v11 = vor.u32 1.1754944e-38, %v2653_v5  ;;  %vm2652_vm1 = vcmp.eq.f32.partialorder %v2651_v26, 8.507059e+37 }
 0x79c   : > { %v3761_v46 = vpop.eup %3760 }
 0x79d   : > { %v2643_v0 = vmul.f32 %v3761_v46, %v2641_v28  ;;  %vm2648_vm14 = vweird.f32 %v3761_v46 }
 0x79e   : > { %vm2649_vm0 = vmor %vm2647_vm15, %vm2648_vm14 }
 0x79f   : > { %v2644_v3 = vsub.f32 1.0, %v2643_v0 }
 0x7a1   : > { %v2645_v8 = vmul.f32 %v3761_v46, %v2644_v3 }
 0x7a3   : > { %v2646_v34 = vadd.f32 %v3761_v46, %v2645_v8 }
 0x7a5   : > { %v2650_v17 = vsel %vm2649_vm0, %v3761_v46, %v2646_v34 }
 0x7a6   : > { %v2655_v2 = vsel %vm2652_vm1, %v2654_v11, %v2650_v17 }
 0x7a7   : > { %v2656_v33 = vmul.f32 %v3759_v13, %v2655_v2 }
 0x7a9   : > { %v2661_v38 = vsel %vm1596_vm5, %v2656_v33, 0 }
 0x7aa   : > { %v2680_v39 = vand.u32 4294901760, %v2661_v38 }
 0x7ac   : > { %2711 = vmatmul.f32.vlgmr.msra.gmra.mxu3 %v2680_v39  ;;  %v2681_v36 = vsub.f32 %v2661_v38, %v2680_v39 }
 0x7ad   : > { %2925 = vmatpush.msra.mxu3 %v5005_v6 }
 0x7ae   : > { %2735 = vmatmul.f32.vlgmr.msra.gmra.mxu0 %v2681_v36  ;;  %v2682_v55 = vand.u32 4294901760, %v2681_v36 }
 0x7af   : > { %2927 = vmatpush.msra.mxu3 %v5007_v24  ;;  %2954 = vmatpush.msra.mxu0 %v2855_v31 }
 0x7b0   : > { %2759 = vmatmul.f32.vlgmr.msra.gmra.mxu1 %v2682_v55  ;;  %v2683_v37 = vsub.f32 %v2681_v36, %v2682_v55 }
 0x7b1   : > { %2929 = vmatpush.msra.mxu3 %v5010_v56  ;;  %2958 = vmatpush.msra.mxu0 %v2861_v57 }
 0x7b2   : > { %v2684_v18 = vand.u32 4294901760, %v2683_v37  ;;  %2985 = vmatpush.msra.mxu1 %v5005_v6  ;;  %v3024_v6 = vsub.f32 %v3002_v54, %v3023_v16 }
 0x7b3   : > { %2931 = vmatpush.msra.mxu3 %v5013_v14  ;;  %2962 = vmatpush.msra.mxu0 %v2867_v35 }
 0x7b4   : > { %2685 = vmatmul.f32.vlgmr.msra.gmra.mxu2 %v2684_v18  ;;  %2805 = vmatmul.f32.vlgmr.msrb.gmra.mxu3 %v2680_v39  ;;  %v3025_v50 = vand.u32 4294901760, %v3024_v6 }
 0x7b5   : > { %3052 = vmatpush.xpose.msrb.mxu3 %v3051_v22  ;;  %2896 = vmatpush.msra.mxu2 %v2854_v12 }
 0x7b6   : > { %2966 = vmatpush.msra.mxu0 %v2873_v60  ;;  %2987 = vmatpush.msra.mxu1 %v5007_v24 }
 0x7b7   : > { %2899 = vmatpush.msra.mxu2 %v2860_v23 }
 0x7b8   : > { %2989 = vmatpush.msra.mxu1 %v5010_v56 }
 0x7b9   : > { %2902 = vmatpush.msra.mxu2 %v2866_v29 }
 0x7ba   : > { %2991 = vmatpush.msra.mxu1 %v5013_v14  ;;  %v3026_v14 = vsub.f32 %v3024_v6, %v3025_v50 }
 0x7bb   : > { %2905 = vmatpush.msra.mxu2 %v2872_v30 }
 0x7bc   : > { %2783 = vmatmul.f32.vlgmr.msrb.gmra.mxu2 %v2680_v39  ;;  %v3027_v1 = vand.u32 4294901760, %v3026_v14 }
 0x7bd   : > { %3022 = vmatpush.xpose.msrb.mxu2 %v5018_v27 }
 0x82b   : > { %v2736_v25 = vpop.f32.mrf.mxu0 }
 0x82d   : > { %v2760_v45 = vpop.f32.mrf.mxu1 }
 0x82f   : > { %v2712_v44 = vpop.f32.mrf.mxu3 }
 0x837   : > { %v2686_v48 = vpop.f32.mrf.mxu2  ;;  %v2806_v58 = vpop.f32.mrf.mxu3 }
 0x838   : > { %v2713_v20 = vadd.f32 %v2712_v44, %v2686_v48 }
 0x83a   : > { %v2737_v53 = vadd.f32 %v2736_v25, %v2713_v20 }
 0x83c   : > { %v2761_v32 = vadd.f32 %v2760_v45, %v2737_v53 }
 0x83f   : > { %v2784_v43 = vpop.f32.mrf.mxu2 }
 0x840   : > { %v2785_v13 = vadd.f32 %v2784_v43, %v2761_v32 }
 0x842   : > { %v2807_v4 = vadd.f32 %v2806_v58, %v2785_v13 }
 0x844   : > { %v2810_v19 = vsel %vm1442_vm4, %v2807_v4, 0 }
 0x845   : > { %v2832_v24 = vand.u32 4294901760, %v2810_v19 }
 0x847   : > { %v2833_v56 = vsub.f32 %v2810_v19, %v2832_v24  ;;  %2878 = vmatmul.f32.vlgmr.msrb.gmra.mxu1 %v2832_v24 }
 0x848   : > { %3098 = vmatpush.xpose.msrb.mxu1 %v5018_v27 }
 0x849   : > { %2908 = vmatmul.f32.vlgmr.msra.gmra.mxu2 %v2833_v56  ;;  %v2834_v59 = vand.u32 4294901760, %v2833_v56 }
 0x84a   : > { %3124 = vmatpush.xpose.msra.mxu2 %v3049_v40 }
 0x84b   : > { %2935 = vmatmul.f32.vlgmr.msra.gmra.mxu3 %v2834_v59  ;;  %v2835_v28 = vsub.f32 %v2833_v56, %v2834_v59  ;;  %v1439_v59 = vld [vmem:[#allocation8 + $0x68] sm:$0xff] }
 0x84c   : > { %3146 = vmatpush.xpose.msra.mxu3 %v5018_v27 }
 0x84d   : > { %v2836_v46 = vand.u32 4294901760, %v2835_v28 }
 0x84f   : > { %2837 = vmatmul.f32.vlgmr.msrb.gmra.mxu0 %v2836_v46  ;;  %2993 = vmatmul.f32.vlgmr.msra.gmra.mxu1 %v2832_v24  ;;  %v3348_v46 = vand.u32 4294901760, %v1439_v59 }
 0x850   : > { %3075 = vmatpush.xpose.msrb.mxu0 %v5021_v10 }
 0x851   : > { %3028 = vmatmul.f32.vlgmr.msrb.gmra.mxu2 %v3027_v1  ;;  %v1438_v1 = vld [vmem:[#allocation8 + $0x60] sm:$0xff] }
 0x853   : > { %3054 = vmatmul.f32.vlgmr.msrb.gmra.mxu3 %v3023_v16 }
 0x857   : > { %2968 = vmatmul.f32.vlgmr.msra.gmra.mxu0 %v2832_v24  ;;  %3102 = vmatmul.f32.vlgmr.msrb.gmra.mxu1 %v3025_v50  ;;  %v1440_v24 = vld [vmem:[#allocation8 + $0x70] sm:$0xff] }
 0x858   : > { %v3346_v56 = vand.u32 4294901760, %v1440_v24 }
 0x859   : > { %3126 = vmatmul.f32.vlgmr.msra.gmra.mxu2 %v3023_v16 }
 0x85a   : > { %v3380_v28 = vsub.f32 %v1440_v24, %v3346_v56 }
 0x85b   : > { %3148 = vmatmul.f32.vlgmr.msra.gmra.mxu3 %v3023_v16 }
 0x85f   : > { %3078 = vmatmul.f32.vlgmr.msrb.gmra.mxu0 %v3024_v6  ;;  %v1441_v6 = vld [vmem:[#allocation8 + $0x78] sm:$0xff] }
 0x860   : > { %v3344_v19 = vand.u32 4294901760, %v1441_v6 }
 0x862   : > { %v3374_v50 = vsub.f32 %v1441_v6, %v3344_v19 }
 0x864   : > { %v3375_v14 = vand.u32 4294901760, %v3374_v50 }
 0x8c4   : > { %v2879_v0 = vpop.f32.mrf.mxu1 }
 0x8cc   : > { %v2838_v3 = vpop.f32.mrf.mxu0  ;;  %v2909_v7 = vpop.f32.mrf.mxu2 }
 0x8cd   : > { %v2880_v5 = vadd.f32 %v2879_v0, %v2838_v3  ;;  %v2994_v34 = vpop.f32.mrf.mxu1  ;;  %v3376_v0 = vsub.f32 %v3374_v50, %v3375_v14  ;;  %v3381_v3 = vand.u32 4294901760, %v3380_v28 }
 0x8ce   : > { %v2936_v8 = vpop.f32.mrf.mxu3 }
 0x8cf   : > { %v2910_v26 = vadd.f32 %v2909_v7, %v2880_v5  ;;  %v3386_v7 = vsub.f32 %v1439_v59, %v3348_v46  ;;  %v3350_v5 = vand.u32 4294901760, %v1438_v1 }
 0x8d1   : > { %v2937_v27 = vadd.f32 %v2936_v8, %v2910_v26  ;;  %v3377_v8 = vand.u32 4294901760, %v3376_v0  ;;  %v3382_v26 = vsub.f32 %v3380_v28, %v3381_v3 }
 0x8d4   : > { %v2969_v11 = vpop.f32.mrf.mxu0  ;;  %v3029_v2 = vpop.f32.mrf.mxu2 }
 0x8d5   : > { %v2970_v17 = vadd.f32 %v2969_v11, %v2937_v27  ;;  %v3103_v55 = vpop.f32.mrf.mxu1  ;;  %v3387_v27 = vand.u32 4294901760, %v3386_v7  ;;  %v3383_v11 = vand.u32 4294901760, %v3382_v26 }
 0x8d6   : > { %v3055_v10 = vpop.f32.mrf.mxu3 }
 0x8d7   : > { %v2995_v33 = vadd.f32 %v2994_v34, %v2970_v17  ;;  %v3056_v39 = vadd.f32 %v3055_v10, %v3029_v2  ;;  %v3392_v34 = vsub.f32 %v1438_v1, %v3350_v5  ;;  %v3388_v17 = vsub.f32 %v3386_v7, %v3387_v27 }
 0x8d9   : > { %v5049_v38 = vadd.f32 %v2995_v33, %v5001_v47  ;;  %v3393_v2 = vand.u32 4294901760, %v3392_v34  ;;  %v3389_v33 = vand.u32 4294901760, %v3388_v17 }
 0x8db   : > { %v3394_v10 = vsub.f32 %v3392_v34, %v3393_v2 }
 0x8dc   : > { %v3079_v40 = vpop.f32.mrf.mxu0  ;;  %v3127_v37 = vpop.f32.mrf.mxu2 }
 0x8dd   : > { %v3080_v36 = vadd.f32 %v3079_v40, %v3056_v39  ;;  %v3395_v39 = vand.u32 4294901760, %v3394_v10 }
 0x8de   : > { %v3149_v18 = vpop.f32.mrf.mxu3 }
 0x8df   : > { %v3104_v63 = vadd.f32 %v3103_v55, %v3080_v36 }
 0x8e1   : > { %v3128_v12 = vadd.f32 %v3127_v37, %v3104_v63 }
 0x8e3   : > { %v3150_v22 = vadd.f32 %v3149_v18, %v3128_v12 }
 0x8e5   : > { %v3152_v23 = vmul.f32 0.17677669, %v3150_v22 }
 0x8e7   : > { %v3153_v29 = vsel %vm1596_vm5, %v3152_v23, -inf }
 0x8e8   : > { %3154 = vmax.xlane.f32.xlu2 %v3153_v29 }
 0x900   : > { %3177 = vrot.lane.b32.xlu2 %v4918_v21, %s3973_s7 }
 0x95b   : > { %v3155_v30 = vpop.xlane.xlu2 %3154 }
 0x95c   : > { %v3156_v31 = vsub.f32 %v3152_v23, %v3155_v30 }
 0x95e   : > { %v3157_v47 = vmul.f32 1.442695, %v3156_v31 }
 0x960   : > { %3762 = vpow2.f32 %v3157_v47 }
 0x963   : > { %v3178_v49 = vpop.permute.xlu2 %3177 }
 0x964   : > { %v3198_v57 = vand.u32 4294901760, %v3178_v49 }
 0x966   : > { %v3763_v62 = vpop.eup %3762  ;;  %v3225_v9 = vsub.f32 %v3178_v49, %v3198_v57  ;;  %3199 = vmatpush.msra.mxu0 %v3198_v57  ;;  %3275 = vmatpush.msrb.mxu3 %v3198_v57 }
 0x967   : > { %v3159_v35 = vsel %vm1596_vm5, %v3763_v62, 0.0 }
 0x968   : > { %v3226_v42 = vand.u32 4294901760, %v3225_v9  ;;  %3160 = vadd.xlane.f32.xlu1 %v3159_v35  ;;  %3252 = vmatpush.msrb.mxu2 %v3225_v9 }
 0x969   : > { %3378 = vmatpush.msra.mxu3 %v3377_v8 }
 0x96a   : > { %v3227_v51 = vsub.f32 %v3225_v9, %v3226_v42  ;;  %3301 = vmatpush.msrb.mxu0 %v3226_v42  ;;  %3345 = vmatpush.msra.mxu2 %v3344_v19 }
 0x96b   : > { %3384 = vmatpush.msra.mxu3 %v3383_v11 }
 0x96c   : > { %v3228_v60 = vand.u32 4294901760, %v3227_v51  ;;  %3347 = vmatpush.msra.mxu2 %v3346_v56 }
 0x96d   : > { %3390 = vmatpush.msra.mxu3 %v3389_v33 }
 0x96e   : > { %3229 = vmatpush.msra.mxu1 %v3228_v60  ;;  %3349 = vmatpush.msra.mxu2 %v3348_v46 }
 0x96f   : > { %3396 = vmatpush.msra.mxu3 %v3395_v39 }
 0x970   : > { %3323 = vmatpush.msrb.mxu1 %v3198_v57  ;;  %3351 = vmatpush.msra.mxu2 %v3350_v5 }
 0x9db   : > { %v3161_v21 = vpop.xlane.xlu1 %3160 }
 0x9dc   : > { %3764 = vrcp.f32 %v3161_v21  ;;  %v3173_v44 = vand.u32 2147483648, %v3161_v21  ;;  %v3171_v20 = vand.u32 2147483647, %v3161_v21  ;;  %vm3167_vm3 = vweird.f32 %v3161_v21 }
 0x9de   : > { %v3174_v25 = vor.u32 1.1754944e-38, %v3173_v44  ;;  %vm3172_vm7 = vcmp.eq.f32.partialorder %v3171_v20, 8.507059e+37 }
 0x9e2   : > { %v3765_v61 = vpop.eup %3764 }
 0x9e3   : > { %v3163_v15 = vmul.f32 %v3765_v61, %v3161_v21  ;;  %vm3168_vm2 = vweird.f32 %v3765_v61 }
 0x9e4   : > { %vm3169_vm6 = vmor %vm3167_vm3, %vm3168_vm2 }
 0x9e5   : > { %v3164_v41 = vsub.f32 1.0, %v3163_v15 }
 0x9e7   : > { %v3165_v48 = vmul.f32 %v3765_v61, %v3164_v41 }
 0x9e9   : > { %v3166_v52 = vadd.f32 %v3765_v61, %v3165_v48 }
 0x9eb   : > { %v3170_v53 = vsel %vm3169_vm6, %v3765_v61, %v3166_v52  ;;  %v3745_v52 = vld [vmem:[%s5102_s5] ss:$0 sm:$0xff] }
 0x9ec   : > { %v3175_v54 = vsel %vm3172_vm7, %v3174_v25, %v3170_v53 }
 0x9ed   : > { %v3176_v45 = vmul.f32 %v3763_v62, %v3175_v54  ;;  %v3766_v54 = vld [vmem:[%s4124_s11] sm:$0xff] }
 0x9ef   : > { %v3181_v32 = vsel %vm1596_vm5, %v3176_v45, 0 }
 0x9f0   : > { %v3200_v16 = vand.u32 4294901760, %v3181_v32 }
 0x9f2   : > { %3231 = vmatmul.f32.vlgmr.msra.gmra.mxu1 %v3200_v16  ;;  %v3201_v43 = vsub.f32 %v3181_v32, %v3200_v16 }
 0x9f3   : > { %3445 = vmatpush.msra.mxu1 %v3344_v19 }
 0x9f4   : > { %3255 = vmatmul.f32.vlgmr.msrb.gmra.mxu2 %v3201_v43  ;;  %v3202_v13 = vand.u32 4294901760, %v3201_v43 }
 0x9f5   : > { %3447 = vmatpush.msra.mxu1 %v3346_v56  ;;  %3474 = vmatpush.msrb.mxu2 %v3375_v14 }
 0x9f6   : > { %3279 = vmatmul.f32.vlgmr.msrb.gmra.mxu3 %v3202_v13  ;;  %v3203_v58 = vsub.f32 %v3201_v43, %v3202_v13 }
 0x9f7   : > { %3449 = vmatpush.msra.mxu1 %v3348_v46  ;;  %3478 = vmatpush.msrb.mxu2 %v3381_v3 }
 0x9f8   : > { %v3204_v4 = vand.u32 4294901760, %v3203_v58  ;;  %3505 = vmatpush.msrb.mxu3 %v3344_v19 }
 0x9f9   : > { %3451 = vmatpush.msra.mxu1 %v3350_v5  ;;  %3482 = vmatpush.msrb.mxu2 %v3387_v27 }
 0x9fa   : > { %3205 = vmatmul.f32.vlgmr.msra.gmra.mxu0 %v3204_v4  ;;  %3325 = vmatmul.f32.vlgmr.msrb.gmra.mxu1 %v3200_v16 }
 0x9fb   : > { %3416 = vmatpush.msra.mxu0 %v3374_v50  ;;  %3486 = vmatpush.msrb.mxu2 %v3393_v2 }
 0x9fc   : > { %3507 = vmatpush.msrb.mxu3 %v3346_v56 }
 0x9fd   : > { %3419 = vmatpush.msra.mxu0 %v3380_v28 }
 0x9fe   : > { %3509 = vmatpush.msrb.mxu3 %v3348_v46 }
 0x9ff   : > { %3422 = vmatpush.msra.mxu0 %v3386_v7 }
 0xa00   : > { %3511 = vmatpush.msrb.mxu3 %v3350_v5 }
 0xa01   : > { %3425 = vmatpush.msra.mxu0 %v3392_v34 }
 0xa02   : > { %3303 = vmatmul.f32.vlgmr.msrb.gmra.mxu0 %v3200_v16 }
 0xa6f   : > { %v3232_v40 = vpop.f32.mrf.mxu1 }
 0xa77   : > { %v3206_v36 = vpop.f32.mrf.mxu0  ;;  %v3256_v63 = vpop.f32.mrf.mxu2 }
 0xa78   : > { %v3233_v55 = vadd.f32 %v3232_v40, %v3206_v36  ;;  %v3326_v29 = vpop.f32.mrf.mxu1 }
 0xa79   : > { %v3280_v12 = vpop.f32.mrf.mxu3 }
 0xa7a   : > { %v3257_v37 = vadd.f32 %v3256_v63, %v3233_v55 }
 0xa7c   : > { %v3281_v18 = vadd.f32 %v3280_v12, %v3257_v37 }
 0xa7f   : > { %v3304_v22 = vpop.f32.mrf.mxu0 }
 0xa80   : > { %v3305_v23 = vadd.f32 %v3304_v22, %v3281_v18 }
 0xa82   : > { %v3327_v30 = vadd.f32 %v3326_v29, %v3305_v23 }
 0xa84   : > { %v3330_v31 = vsel %vm1442_vm4, %v3327_v30, 0 }
 0xa85   : > { %v3352_v47 = vand.u32 4294901760, %v3330_v31 }
 0xa87   : > { %v3353_v49 = vsub.f32 %v3330_v31, %v3352_v47  ;;  %3398 = vmatmul.f32.vlgmr.msra.gmra.mxu3 %v3352_v47 }
 0xa89   : > { %3428 = vmatmul.f32.vlgmr.msra.gmra.mxu0 %v3353_v49  ;;  %v3354_v57 = vand.u32 4294901760, %v3353_v49 }
 0xa8b   : > { %3455 = vmatmul.f32.vlgmr.msra.gmra.mxu1 %v3354_v57  ;;  %v3355_v62 = vsub.f32 %v3353_v49, %v3354_v57 }
 0xa8d   : > { %v3356_v9 = vand.u32 4294901760, %v3355_v62 }
 0xa8f   : > { %3357 = vmatmul.f32.vlgmr.msra.gmra.mxu2 %v3356_v9  ;;  %3513 = vmatmul.f32.vlgmr.msrb.gmra.mxu3 %v3352_v47 }
 0xa97   : > { %3488 = vmatmul.f32.vlgmr.msrb.gmra.mxu2 %v3352_v47 }
 0xb06   : > { %v3429_v60 = vpop.f32.mrf.mxu0 }
 0xb08   : > { %v3456_v61 = vpop.f32.mrf.mxu1 }
 0xb0a   : > { %v3399_v35 = vpop.f32.mrf.mxu3 }
 0xb12   : > { %v3358_v42 = vpop.f32.mrf.mxu2  ;;  %v3514_v48 = vpop.f32.mrf.mxu3 }
 0xb13   : > { %v3400_v51 = vadd.f32 %v3399_v35, %v3358_v42 }
 0xb15   : > { %v3430_v21 = vadd.f32 %v3429_v60, %v3400_v51 }
 0xb17   : > { %v3457_v15 = vadd.f32 %v3456_v61, %v3430_v21 }
 0xb1a   : > { %v3489_v41 = vpop.f32.mrf.mxu2 }
 0xb1b   : > { %v3490_v44 = vadd.f32 %v3489_v41, %v3457_v15 }
 0xb1d   : > { %v3515_v20 = vadd.f32 %v3514_v48, %v3490_v44 }
 0xb1f   : > { %v3517_v25 = vadd.f32 %v3515_v20, %v5049_v38 }
 0xb21   : > { %v3522_v53 = vadd.f32 %v3745_v52, %v3517_v25 }
 0xb23   : > { %v3523_v45 = vadd.f32 %v3766_v54, %v3522_v53 }
 0xb25   : > { %3524 = vst [vmem:[%s316_s17] sm:$0xff] %v3523_v45 }
 0xb26   : > { %3914 = shalt.err (!%p3911_p11)
}
 0xb27   : > { %3672 = dma.vmem_to_hbm [thread:$0]  (%p4091_p3), %s3539_s27, 128, %s3541_s8, %s3526_s25  }
 0xb28 PF: > { %s3552_s16 = sand.u32 1, %s3949_s21   ;;  %p5110_p12 = scmp.ge.s32.totalorder %s3961_s24, 2 }
 0xb29   : > { %s3553_s11 = scalar_lea.sflag [#allocation4], %s3552_s16 }
 0xb2a   : > { %p3689_p13 = pnand %p5110_p12, %p4044_p6 }
 0xb2c   : > { %p3690_p0 = pneg %p3689_p13 }
 0xb2e   : > { %3944 = dma.done.wait (%p3690_p0), %s3553_s11, 128  }
 0xb2f   : > { %3946 = vsyncadd (%p3690_p0), %s3553_s11, 4294967168  ;;  %p21_p5 = scmp.ge.s32.totalorder %s4078_s10, 4   ;;  %s5111_s21 = smov %s3953_s22 }
 0xb30   : > { %s5112_s22 = smov %s3957_s23  ;;  %s5113_s23 = smov %s4087_s13 }
 0xb31   : > { %s5114_s24 = smov %s4078_s10  ;;  %23 = sbr.rel (!%p21_p5) target bundleno = 7 (0x7), region = 101 }
 0xb36   :  { %3559 = vsyncpa [#allocation3], 1 }
 0xb37   :  { %3561 = vsyncpa [#allocation3 + $0x1], 1 }
 0xb38   :  { %3562 = vsyncpa [#allocation6], 1 }
 0xb39   :  { %3563 = vsyncpa [#allocation9], 1 }
 0xb3a   :  { %3564 = vsyncpa [#allocation4], 1 }
 0xb3b   :  { %3566 = vsyncpa [#allocation4 + $0x1], 1 }

</bundles_post_ra>
